<compile_context>
chip_gen: v7x
topology: tpu7x:2x2x1
jax: 0.10.0
libtpu: 0.0.40
codegen_flags: <defaults>
</compile_context>

<pallas_src>
import functools

import jax
import jax.numpy as jnp
from jax.experimental import pallas as pl
from jax.experimental.pallas import tpu as pltpu


# ----------------------------- small helpers --------------------------------
def _round_up(x, m):
    return (x + m - 1) // m * m


def _row_tile(rows, max_tile=512):
    """Largest multiple-of-8 tile that divides `rows` (rows is a multiple of 8)."""
    t = min(rows, max_tile)
    t -= t % 8
    t = max(t, 8)
    while rows % t:
        t -= 8
    return t


# -------------------- hoisted layer-0 input projection ----------------------
def input_proj_kernel(x_ref, w_ref, b_ref, out_ref):
    out_ref[...] = (
        jnp.dot(x_ref[...], w_ref[...], preferred_element_type=jnp.float32)
        + b_ref[...]
    ).astype(out_ref.dtype)


def input_proj(x2, w_t, b, *, tm):
    """x2: (rows, D), w_t: (D, 3*Hp), b: (1, 3*Hp) -> (rows, 3*Hp)."""
    rows, d = x2.shape
    cols = w_t.shape[1]
    return pl.pallas_call(
        input_proj_kernel,
        out_shape=jax.ShapeDtypeStruct((rows, cols), jnp.float32),
        grid_spec=pltpu.PrefetchScalarGridSpec(
            num_scalar_prefetch=0,
            grid=(rows // tm,),
            in_specs=[
                pl.BlockSpec((tm, d), lambda i: (i, 0)),
                pl.BlockSpec((d, cols), lambda i: (0, 0)),
                pl.BlockSpec((1, cols), lambda i: (0, 0)),
            ],
            out_specs=pl.BlockSpec((tm, cols), lambda i: (i, 0)),
        ),
        compiler_params=pltpu.CompilerParams(dimension_semantics=("parallel",)),
    )(x2, w_t, b)


# ------------- fused 3-layer GRU recurrence + projection + L2 norm ----------
def fused_gru_kernel(gi0_ref,
                     whh0_ref, wih1_ref, whh1_ref, wih2_ref, whh2_ref,
                     bhh0_ref, bih1_ref, bhh1_ref, bih2_ref, bhh2_ref,
                     pw_ref, pb_ref,
                     out_ref,
                     h0_ref, h1_ref, h2_ref,
                     *, hp):
    t = pl.program_id(0)
    nsteps = pl.num_programs(0)

    @pl.when(t == 0)
    def _():
        h0_ref[...] = jnp.zeros_like(h0_ref)
        h1_ref[...] = jnp.zeros_like(h1_ref)
        h2_ref[...] = jnp.zeros_like(h2_ref)

    def gru_cell(gi, h_prev, whh_ref, bhh_ref):
        # gi already includes b_ih; gh includes b_hh (so b_hn stays inside r*).
        gh = jnp.dot(h_prev, whh_ref[...],
                     preferred_element_type=jnp.float32) + bhh_ref[...]
        rz = jax.nn.sigmoid(gi[:, :2 * hp] + gh[:, :2 * hp])     # lane-aligned slab
        r = rz[:, :hp]
        z = rz[:, hp:]
        n = jnp.tanh(gi[:, 2 * hp:] + r * gh[:, 2 * hp:])
        return n + z * (h_prev - n)                               # (1-z)*n + z*h

    # layer 0: input projection (x @ W_ih0^T + b_ih0) was hoisted out of the loop
    h0 = gru_cell(gi0_ref[0], h0_ref[...], whh0_ref, bhh0_ref)
    h0_ref[...] = h0

    # layer 1
    gi1 = jnp.dot(h0, wih1_ref[...],
                  preferred_element_type=jnp.float32) + bih1_ref[...]
    h1 = gru_cell(gi1, h1_ref[...], whh1_ref, bhh1_ref)
    h1_ref[...] = h1

    # layer 2
    gi2 = jnp.dot(h1, wih2_ref[...],
                  preferred_element_type=jnp.float32) + bih2_ref[...]
    h2 = gru_cell(gi2, h2_ref[...], whh2_ref, bhh2_ref)
    h2_ref[...] = h2

    # only the last frame is consumed -> project + normalize once, store once
    @pl.when(t == nsteps - 1)
    def _():
        y = jnp.dot(h2, pw_ref[...],
                    preferred_element_type=jnp.float32) + pb_ref[...]
        ss = jnp.sum(y * y, axis=-1, keepdims=True)
        inv = jax.lax.rsqrt(ss + 1e-12)
        out_ref[...] = (y * inv).astype(out_ref.dtype)


def fused_gru(gi0, w, *, hp, fp):
    """gi0: (T, B_pad, 3*Hp) time-major precomputed layer-0 input gates."""
    T, b_pad, g3 = gi0.shape
    kernel = functools.partial(fused_gru_kernel, hp=hp)

    def const(shape):
        return pl.BlockSpec(shape, lambda t: (0, 0))

    return pl.pallas_call(
        kernel,
        out_shape=jax.ShapeDtypeStruct((b_pad, fp), jnp.float32),
        grid_spec=pltpu.PrefetchScalarGridSpec(
            num_scalar_prefetch=0,
            grid=(T,),
            in_specs=[
                pl.BlockSpec((1, b_pad, g3), lambda t: (t, 0, 0)),  # gi0 at time t
                const((hp, g3)),   # W_hh0^T
                const((hp, g3)),   # W_ih1^T
                const((hp, g3)),   # W_hh1^T
                const((hp, g3)),   # W_ih2^T
                const((hp, g3)),   # W_hh2^T
                const((1, g3)),    # b_hh0
                const((1, g3)),    # b_ih1
                const((1, g3)),    # b_hh1
                const((1, g3)),    # b_ih2
                const((1, g3)),    # b_hh2
                const((hp, fp)),   # proj W^T
                const((1, fp)),    # proj b
            ],
            out_specs=pl.BlockSpec((b_pad, fp), lambda t: (0, 0)),   # resident over T
            scratch_shapes=[pltpu.VMEM((b_pad, hp), jnp.float32)] * 3,
        ),
        compiler_params=pltpu.CompilerParams(
            dimension_semantics=("arbitrary",)),   # recurrence -> sequential
    )(gi0, w["whh0_t"], w["wih1_t"], w["whh1_t"], w["wih2_t"], w["whh2_t"],
      w["bhh0"], w["bih1"], w["bhh1"], w["bih2"], w["bhh2"],
      w["pw_t"], w["pb"])


# ------------------------------ parameters ----------------------------------
def init_params(key, n_mels, n_hid, n_layers, fc_dim):
    """PyTorch-layout params: GRU weights xavier-normal, biases zero; Linear small."""
    layers = []
    for layer in range(n_layers):
        d_in = n_mels if layer == 0 else n_hid
        key, k1, k2 = jax.random.split(key, 3)
        std_ih = (2.0 / (d_in + 3 * n_hid)) ** 0.5
        std_hh = (2.0 / (n_hid + 3 * n_hid)) ** 0.5
        layers.append(dict(
            w_ih=jax.random.normal(k1, (3 * n_hid, d_in), jnp.float32) * std_ih,
            w_hh=jax.random.normal(k2, (3 * n_hid, n_hid), jnp.float32) * std_hh,
            b_ih=jnp.zeros((3 * n_hid,), jnp.float32),
            b_hh=jnp.zeros((3 * n_hid,), jnp.float32),
        ))
    key, kp = jax.random.split(key)
    w_proj = jax.random.normal(kp, (fc_dim, n_hid), jnp.float32) * (1.0 / n_hid) ** 0.5
    b_proj = jnp.zeros((fc_dim,), jnp.float32)
    return dict(gru=layers, w_proj=w_proj, b_proj=b_proj,
                n_mels=n_mels, n_hid=n_hid, fc_dim=fc_dim)


def _pad_gate_mat(w, d_in, h, hp, d_pad):
    """Torch (3h, d_in) [r,z,n] -> kernel (d_pad, 3*hp), gate-blocked lane-aligned."""
    w3 = w.reshape(3, h, d_in).transpose(0, 2, 1)                    # (3, d_in, h)
    w3 = jnp.pad(w3, ((0, 0), (0, d_pad - d_in), (0, hp - h)))       # (3, d_pad, hp)
    return jnp.transpose(w3, (1, 0, 2)).reshape(d_pad, 3 * hp)


def _pad_gate_bias(b, h, hp):
    b3 = jnp.pad(b.reshape(3, h), ((0, 0), (0, hp - h)))
    return b3.reshape(1, 3 * hp)


def prepare_params(params):
    """Pad to TPU-friendly shapes (H, fc_dim -> multiples of 128); zero-padding keeps
    padded hidden lanes exactly zero through the recurrence, so results are exact."""
    h, d, f = params["n_hid"], params["n_mels"], params["fc_dim"]
    hp, fp = _round_up(h, 128), _round_up(f, 128)
    g = params["gru"]
    w = dict(
        wih0_t=_pad_gate_mat(g[0]["w_ih"], d, h, hp, d),   # contracting dim = n_mels
        bih0=_pad_gate_bias(g[0]["b_ih"], h, hp),
        whh0_t=_pad_gate_mat(g[0]["w_hh"], h, h, hp, hp),
        bhh0=_pad_gate_bias(g[0]["b_hh"], h, hp),
        wih1_t=_pad_gate_mat(g[1]["w_ih"], h, h, hp, hp),
        bih1=_pad_gate_bias(g[1]["b_ih"], h, hp),
        whh1_t=_pad_gate_mat(g[1]["w_hh"], h, h, hp, hp),
        bhh1=_pad_gate_bias(g[1]["b_hh"], h, hp),
        wih2_t=_pad_gate_mat(g[2]["w_ih"], h, h, hp, hp),
        bih2=_pad_gate_bias(g[2]["b_ih"], h, hp),
        whh2_t=_pad_gate_mat(g[2]["w_hh"], h, h, hp, hp),
        bhh2=_pad_gate_bias(g[2]["b_hh"], h, hp),
        pw_t=jnp.pad(params["w_proj"].T, ((0, hp - h), (0, fp - f))),
        pb=jnp.pad(params["b_proj"].reshape(1, f), ((0, 0), (0, fp - f))),
    )
    meta = dict(hp=hp, fp=fp, h=h, f=f)
    return w, meta


# ------------------------------- forward ------------------------------------
@functools.partial(jax.jit, static_argnames=("hp", "fp", "h", "f"))
def speaker_embedder_gru(weights, x, *, hp, fp, h, f):
    """x: (batch, frames, n_mels) -> (batch, fc_dim), rows L2-normalized."""
    B, T, d = x.shape
    b_pad = max(8, _round_up(B, 8))                      # sublane padding
    x_tm = jnp.transpose(x, (1, 0, 2)).astype(jnp.float32)   # time-major (T, B, D)
    if b_pad > B:
        x_tm = jnp.pad(x_tm, ((0, 0), (0, b_pad - B), (0, 0)))
    rows = T * b_pad
    x2 = x_tm.reshape(rows, d)
    # hoisted layer-0 input projection: one big (T*B, D) x (D, 3Hp) MXU matmul
    gi0 = input_proj(x2, weights["wih0_t"], weights["bih0"], tm=_row_tile(rows))
    gi0 = gi0.reshape(T, b_pad, 3 * hp)
    out_pad = fused_gru(gi0, weights, hp=hp, fp=fp)      # (b_pad, fp)
    return out_pad[:B, :f]


if __name__ == "__main__":
    # Small shapes consistent with the module's forward (batch, frames, n_mels).
    batch, frames, n_mels = 2, 8, 16
    n_hid, n_layers, fc_dim = 32, 3, 16

    key = jax.random.PRNGKey(0)
    key, kx = jax.random.split(key)
    x = jax.random.normal(kx, (batch, frames, n_mels), jnp.float32)

    params = init_params(key, n_mels, n_hid, n_layers, fc_dim)
    weights, meta = prepare_params(params)

    out = speaker_embedder_gru(weights, x, **meta)
    out = jax.block_until_ready(out)

    assert out.shape == (batch, fc_dim)
    assert bool(jnp.all(jnp.isfinite(out)))
    print("KERNEL_OK")
</pallas_src>

<mosaic_0001>
module attributes {stable_mosaic.version = 11 : i64} {
  func.func @input_proj_kernel(%arg0: i32, %arg1: memref<64x16xf32, #tpu.memory_space<vmem>>, %arg2: memref<16x384xf32, #tpu.memory_space<vmem>>, %arg3: memref<1x384xf32, #tpu.memory_space<vmem>>, %arg4: memref<64x384xf32, #tpu.memory_space<vmem>>) attributes {dimension_semantics = [#tpu.dimension_semantics<parallel>], iteration_bounds = array<i64: 1>, scalar_prefetch = 0 : i64, scratch_operands = 0 : i64, tpu.core_type = #tpu.core_type<tc>, window_params = [{transform_indices = @transform_0, window_bounds = array<i64: 64, 16>}, {pipeline_mode = #tpu.pipeline_mode<synchronous>, transform_indices = @transform_1, window_bounds = array<i64: 16, 384>}, {pipeline_mode = #tpu.pipeline_mode<synchronous>, transform_indices = @transform_2, window_bounds = array<i64: 1, 384>}, {transform_indices = @transform_3, window_bounds = array<i64: 64, 384>}]} {
    %c0 = arith.constant 0 : index
    %c0_0 = arith.constant 0 : index
    %0 = vector.load %arg1[%c0, %c0_0] : memref<64x16xf32, #tpu.memory_space<vmem>>, vector<64x16xf32>
    %c0_1 = arith.constant 0 : index
    %c0_2 = arith.constant 0 : index
    %1 = vector.load %arg2[%c0_1, %c0_2] : memref<16x384xf32, #tpu.memory_space<vmem>>, vector<16x384xf32>
    %cst = arith.constant dense<0.000000e+00> : vector<64x384xf32>
    %2 = tpu.matmul %0, %1, %cst {dimension_numbers = #tpu.dot_dimension_numbers<[1], [0], [0], [1], [0, 0, 1, 1], [], []>} : vector<64x16xf32>, vector<16x384xf32>, vector<64x384xf32> -> vector<64x384xf32>
    %c0_3 = arith.constant 0 : index
    %c0_4 = arith.constant 0 : index
    %3 = vector.load %arg3[%c0_3, %c0_4] : memref<1x384xf32, #tpu.memory_space<vmem>>, vector<1x384xf32>
    %4 = vector.broadcast %3 : vector<1x384xf32> to vector<64x384xf32>
    %5 = arith.addf %2, %4 : vector<64x384xf32>
    %c0_5 = arith.constant 0 : index
    %c0_6 = arith.constant 0 : index
    %6 = vector.load %arg4[%c0_5, %c0_6] : memref<64x384xf32, #tpu.memory_space<vmem>>, vector<64x384xf32>
    tpu.vector_store %arg4[%c0_5, %c0_6], %5 {strides = array<i32>} : memref<64x384xf32, #tpu.memory_space<vmem>>, vector<64x384xf32>,
    return
  }
  func.func @transform_0(%arg0: i32) -> (i32, i32) {
    %c0_i32 = arith.constant 0 : i32
    %c0_i32_0 = arith.constant 0 : i32
    return %arg0, %c0_i32 : i32, i32
  }
  func.func @transform_1(%arg0: i32) -> (i32, i32) {
    %c0_i32 = arith.constant 0 : i32
    %c0_i32_0 = arith.constant 0 : i32
    %c0_i32_1 = arith.constant 0 : i32
    return %c0_i32, %c0_i32_0 : i32, i32
  }
  func.func @transform_2(%arg0: i32) -> (i32, i32) {
    %c0_i32 = arith.constant 0 : i32
    %c0_i32_0 = arith.constant 0 : i32
    %c0_i32_1 = arith.constant 0 : i32
    return %c0_i32, %c0_i32_0 : i32, i32
  }
  func.func @transform_3(%arg0: i32) -> (i32, i32) {
    %c0_i32 = arith.constant 0 : i32
    %c0_i32_0 = arith.constant 0 : i32
    return %arg0, %c0_i32 : i32, i32
  }
}

module attributes {stable_mosaic.version = 11 : i64} {
  func.func @fused_gru_kernel(%arg0: i32, %arg1: memref<1x8x384xf32, #tpu.memory_space<vmem>>, %arg2: memref<128x384xf32, #tpu.memory_space<vmem>>, %arg3: memref<128x384xf32, #tpu.memory_space<vmem>>, %arg4: memref<128x384xf32, #tpu.memory_space<vmem>>, %arg5: memref<128x384xf32, #tpu.memory_space<vmem>>, %arg6: memref<128x384xf32, #tpu.memory_space<vmem>>, %arg7: memref<1x384xf32, #tpu.memory_space<vmem>>, %arg8: memref<1x384xf32, #tpu.memory_space<vmem>>, %arg9: memref<1x384xf32, #tpu.memory_space<vmem>>, %arg10: memref<1x384xf32, #tpu.memory_space<vmem>>, %arg11: memref<1x384xf32, #tpu.memory_space<vmem>>, %arg12: memref<128x128xf32, #tpu.memory_space<vmem>>, %arg13: memref<1x128xf32, #tpu.memory_space<vmem>>, %arg14: memref<8x128xf32, #tpu.memory_space<vmem>>, %arg15: memref<8x128xf32, #tpu.memory_space<vmem>>, %arg16: memref<8x128xf32, #tpu.memory_space<vmem>>, %arg17: memref<8x128xf32, #tpu.memory_space<vmem>>) attributes {dimension_semantics = [#tpu.dimension_semantics<arbitrary>], iteration_bounds = array<i64: 8>, scalar_prefetch = 0 : i64, scratch_operands = 3 : i64, tpu.core_type = #tpu.core_type<tc>, window_params = [{transform_indices = @transform_0, window_bounds = array<i64: 1, 8, 384>}, {pipeline_mode = #tpu.pipeline_mode<synchronous>, transform_indices = @transform_1, window_bounds = array<i64: 128, 384>}, {pipeline_mode = #tpu.pipeline_mode<synchronous>, transform_indices = @transform_2, window_bounds = array<i64: 128, 384>}, {pipeline_mode = #tpu.pipeline_mode<synchronous>, transform_indices = @transform_3, window_bounds = array<i64: 128, 384>}, {pipeline_mode = #tpu.pipeline_mode<synchronous>, transform_indices = @transform_4, window_bounds = array<i64: 128, 384>}, {pipeline_mode = #tpu.pipeline_mode<synchronous>, transform_indices = @transform_5, window_bounds = array<i64: 128, 384>}, {pipeline_mode = #tpu.pipeline_mode<synchronous>, transform_indices = @transform_6, window_bounds = array<i64: 1, 384>}, {pipeline_mode = #tpu.pipeline_mode<synchronous>, transform_indices = @transform_7, window_bounds = array<i64: 1, 384>}, {pipeline_mode = #tpu.pipeline_mode<synchronous>, transform_indices = @transform_8, window_bounds = array<i64: 1, 384>}, {pipeline_mode = #tpu.pipeline_mode<synchronous>, transform_indices = @transform_9, window_bounds = array<i64: 1, 384>}, {pipeline_mode = #tpu.pipeline_mode<synchronous>, transform_indices = @transform_10, window_bounds = array<i64: 1, 384>}, {pipeline_mode = #tpu.pipeline_mode<synchronous>, transform_indices = @transform_11, window_bounds = array<i64: 128, 128>}, {pipeline_mode = #tpu.pipeline_mode<synchronous>, transform_indices = @transform_12, window_bounds = array<i64: 1, 128>}, {pipeline_mode = #tpu.pipeline_mode<synchronous>, transform_indices = @transform_13, window_bounds = array<i64: 8, 128>}]} {
    %c0_i32 = arith.constant 0 : i32
    %0 = arith.cmpi eq, %arg0, %c0_i32 : i32
    %1 = arith.extui %0 : i1 to i32
    %c0_i32_0 = arith.constant 0 : i32
    %2 = arith.cmpi ne, %1, %c0_i32_0 : i32
    scf.if %2 {
      %cst_43 = arith.constant 0.000000e+00 : f32
      %93 = vector.broadcast %cst_43 : f32 to vector<8x128xf32>
      %c0_44 = arith.constant 0 : index
      %c0_45 = arith.constant 0 : index
      %94 = vector.load %arg15[%c0_44, %c0_45] : memref<8x128xf32, #tpu.memory_space<vmem>>, vector<8x128xf32>
      tpu.vector_store %arg15[%c0_44, %c0_45], %93 {strides = array<i32>} : memref<8x128xf32, #tpu.memory_space<vmem>>, vector<8x128xf32>,
      %cst_46 = arith.constant 0.000000e+00 : f32
      %95 = vector.broadcast %cst_46 : f32 to vector<8x128xf32>
      %c0_47 = arith.constant 0 : index
      %c0_48 = arith.constant 0 : index
      %96 = vector.load %arg16[%c0_47, %c0_48] : memref<8x128xf32, #tpu.memory_space<vmem>>, vector<8x128xf32>
      tpu.vector_store %arg16[%c0_47, %c0_48], %95 {strides = array<i32>} : memref<8x128xf32, #tpu.memory_space<vmem>>, vector<8x128xf32>,
      %cst_49 = arith.constant 0.000000e+00 : f32
      %97 = vector.broadcast %cst_49 : f32 to vector<8x128xf32>
      %c0_50 = arith.constant 0 : index
      %c0_51 = arith.constant 0 : index
      %98 = vector.load %arg17[%c0_50, %c0_51] : memref<8x128xf32, #tpu.memory_space<vmem>>, vector<8x128xf32>
      tpu.vector_store %arg17[%c0_50, %c0_51], %97 {strides = array<i32>} : memref<8x128xf32, #tpu.memory_space<vmem>>, vector<8x128xf32>,
    } else {
    }
    %c0 = arith.constant 0 : index
    %c0_1 = arith.constant 0 : index
    %c0_2 = arith.constant 0 : index
    %3 = vector.load %arg1[%c0, %c0_1, %c0_2] : memref<1x8x384xf32, #tpu.memory_space<vmem>>, vector<1x8x384xf32>
    %4 = vector.shape_cast %3 : vector<1x8x384xf32> to vector<8x384xf32>
    %c0_3 = arith.constant 0 : index
    %c0_4 = arith.constant 0 : index
    %5 = vector.load %arg15[%c0_3, %c0_4] : memref<8x128xf32, #tpu.memory_space<vmem>>, vector<8x128xf32>
    %c0_5 = arith.constant 0 : index
    %c0_6 = arith.constant 0 : index
    %6 = vector.load %arg2[%c0_5, %c0_6] : memref<128x384xf32, #tpu.memory_space<vmem>>, vector<128x384xf32>
    %cst = arith.constant dense<0.000000e+00> : vector<8x384xf32>
    %7 = tpu.matmul %5, %6, %cst {dimension_numbers = #tpu.dot_dimension_numbers<[1], [0], [0], [1], [0, 0, 1, 1], [], []>} : vector<8x128xf32>, vector<128x384xf32>, vector<8x384xf32> -> vector<8x384xf32>
    %c0_7 = arith.constant 0 : index
    %c0_8 = arith.constant 0 : index
    %8 = vector.load %arg7[%c0_7, %c0_8] : memref<1x384xf32, #tpu.memory_space<vmem>>, vector<1x384xf32>
    %9 = vector.broadcast %8 : vector<1x384xf32> to vector<8x384xf32>
    %10 = arith.addf %7, %9 : vector<8x384xf32>
    %11 = vector.extract_strided_slice %4 {offsets = [0, 0], sizes = [8, 256], strides = [1, 1]} : vector<8x384xf32> to vector<8x256xf32>
    %12 = vector.extract_strided_slice %10 {offsets = [0, 0], sizes = [8, 256], strides = [1, 1]} : vector<8x384xf32> to vector<8x256xf32>
    %13 = arith.addf %11, %12 : vector<8x256xf32>
    %14 = arith.negf %13 : vector<8x256xf32>
    %15 = math.exp %14 : vector<8x256xf32>
    %cst_9 = arith.constant 1.000000e+00 : f32
    %16 = vector.broadcast %cst_9 : f32 to vector<8x256xf32>
    %17 = arith.addf %16, %15 : vector<8x256xf32>
    %18 = arith.divf %16, %17 : vector<8x256xf32>
    %19 = vector.extract_strided_slice %18 {offsets = [0, 0], sizes = [8, 128], strides = [1, 1]} : vector<8x256xf32> to vector<8x128xf32>
    %20 = vector.extract_strided_slice %18 {offsets = [0, 128], sizes = [8, 128], strides = [1, 1]} : vector<8x256xf32> to vector<8x128xf32>
    %21 = vector.extract_strided_slice %4 {offsets = [0, 256], sizes = [8, 128], strides = [1, 1]} : vector<8x384xf32> to vector<8x128xf32>
    %22 = vector.extract_strided_slice %10 {offsets = [0, 256], sizes = [8, 128], strides = [1, 1]} : vector<8x384xf32> to vector<8x128xf32>
    %23 = arith.mulf %19, %22 : vector<8x128xf32>
    %24 = arith.addf %21, %23 : vector<8x128xf32>
    %25 = math.tanh %24 : vector<8x128xf32>
    %26 = arith.subf %5, %25 : vector<8x128xf32>
    %27 = arith.mulf %20, %26 : vector<8x128xf32>
    %28 = arith.addf %25, %27 : vector<8x128xf32>
    %c0_10 = arith.constant 0 : index
    %c0_11 = arith.constant 0 : index
    %29 = vector.load %arg15[%c0_10, %c0_11] : memref<8x128xf32, #tpu.memory_space<vmem>>, vector<8x128xf32>
    tpu.vector_store %arg15[%c0_10, %c0_11], %28 {strides = array<i32>} : memref<8x128xf32, #tpu.memory_space<vmem>>, vector<8x128xf32>,
    %c0_12 = arith.constant 0 : index
    %c0_13 = arith.constant 0 : index
    %30 = vector.load %arg3[%c0_12, %c0_13] : memref<128x384xf32, #tpu.memory_space<vmem>>, vector<128x384xf32>
    %cst_14 = arith.constant dense<0.000000e+00> : vector<8x384xf32>
    %31 = tpu.matmul %28, %30, %cst_14 {dimension_numbers = #tpu.dot_dimension_numbers<[1], [0], [0], [1], [0, 0, 1, 1], [], []>} : vector<8x128xf32>, vector<128x384xf32>, vector<8x384xf32> -> vector<8x384xf32>
    %c0_15 = arith.constant 0 : index
    %c0_16 = arith.constant 0 : index
    %32 = vector.load %arg8[%c0_15, %c0_16] : memref<1x384xf32, #tpu.memory_space<vmem>>, vector<1x384xf32>
    %33 = vector.broadcast %32 : vector<1x384xf32> to vector<8x384xf32>
    %34 = arith.addf %31, %33 : vector<8x384xf32>
    %c0_17 = arith.constant 0 : index
    %c0_18 = arith.constant 0 : index
    %35 = vector.load %arg16[%c0_17, %c0_18] : memref<8x128xf32, #tpu.memory_space<vmem>>, vector<8x128xf32>
    %c0_19 = arith.constant 0 : index
    %c0_20 = arith.constant 0 : index
    %36 = vector.load %arg4[%c0_19, %c0_20] : memref<128x384xf32, #tpu.memory_space<vmem>>, vector<128x384xf32>
    %cst_21 = arith.constant dense<0.000000e+00> : vector<8x384xf32>
    %37 = tpu.matmul %35, %36, %cst_21 {dimension_numbers = #tpu.dot_dimension_numbers<[1], [0], [0], [1], [0, 0, 1, 1], [], []>} : vector<8x128xf32>, vector<128x384xf32>, vector<8x384xf32> -> vector<8x384xf32>
    %c0_22 = arith.constant 0 : index
    %c0_23 = arith.constant 0 : index
    %38 = vector.load %arg9[%c0_22, %c0_23] : memref<1x384xf32, #tpu.memory_space<vmem>>, vector<1x384xf32>
    %39 = vector.broadcast %38 : vector<1x384xf32> to vector<8x384xf32>
    %40 = arith.addf %37, %39 : vector<8x384xf32>
    %41 = vector.extract_strided_slice %34 {offsets = [0, 0], sizes = [8, 256], strides = [1, 1]} : vector<8x384xf32> to vector<8x256xf32>
    %42 = vector.extract_strided_slice %40 {offsets = [0, 0], sizes = [8, 256], strides = [1, 1]} : vector<8x384xf32> to vector<8x256xf32>
    %43 = arith.addf %41, %42 : vector<8x256xf32>
    %44 = arith.negf %43 : vector<8x256xf32>
    %45 = math.exp %44 : vector<8x256xf32>
    %cst_24 = arith.constant 1.000000e+00 : f32
    %46 = vector.broadcast %cst_24 : f32 to vector<8x256xf32>
    %47 = arith.addf %46, %45 : vector<8x256xf32>
    %48 = arith.divf %46, %47 : vector<8x256xf32>
    %49 = vector.extract_strided_slice %48 {offsets = [0, 0], sizes = [8, 128], strides = [1, 1]} : vector<8x256xf32> to vector<8x128xf32>
    %50 = vector.extract_strided_slice %48 {offsets = [0, 128], sizes = [8, 128], strides = [1, 1]} : vector<8x256xf32> to vector<8x128xf32>
    %51 = vector.extract_strided_slice %34 {offsets = [0, 256], sizes = [8, 128], strides = [1, 1]} : vector<8x384xf32> to vector<8x128xf32>
    %52 = vector.extract_strided_slice %40 {offsets = [0, 256], sizes = [8, 128], strides = [1, 1]} : vector<8x384xf32> to vector<8x128xf32>
    %53 = arith.mulf %49, %52 : vector<8x128xf32>
    %54 = arith.addf %51, %53 : vector<8x128xf32>
    %55 = math.tanh %54 : vector<8x128xf32>
    %56 = arith.subf %35, %55 : vector<8x128xf32>
    %57 = arith.mulf %50, %56 : vector<8x128xf32>
    %58 = arith.addf %55, %57 : vector<8x128xf32>
    %c0_25 = arith.constant 0 : index
    %c0_26 = arith.constant 0 : index
    %59 = vector.load %arg16[%c0_25, %c0_26] : memref<8x128xf32, #tpu.memory_space<vmem>>, vector<8x128xf32>
    tpu.vector_store %arg16[%c0_25, %c0_26], %58 {strides = array<i32>} : memref<8x128xf32, #tpu.memory_space<vmem>>, vector<8x128xf32>,
    %c0_27 = arith.constant 0 : index
    %c0_28 = arith.constant 0 : index
    %60 = vector.load %arg5[%c0_27, %c0_28] : memref<128x384xf32, #tpu.memory_space<vmem>>, vector<128x384xf32>
    %cst_29 = arith.constant dense<0.000000e+00> : vector<8x384xf32>
    %61 = tpu.matmul %58, %60, %cst_29 {dimension_numbers = #tpu.dot_dimension_numbers<[1], [0], [0], [1], [0, 0, 1, 1], [], []>} : vector<8x128xf32>, vector<128x384xf32>, vector<8x384xf32> -> vector<8x384xf32>
    %c0_30 = arith.constant 0 : index
    %c0_31 = arith.constant 0 : index
    %62 = vector.load %arg10[%c0_30, %c0_31] : memref<1x384xf32, #tpu.memory_space<vmem>>, vector<1x384xf32>
    %63 = vector.broadcast %62 : vector<1x384xf32> to vector<8x384xf32>
    %64 = arith.addf %61, %63 : vector<8x384xf32>
    %c0_32 = arith.constant 0 : index
    %c0_33 = arith.constant 0 : index
    %65 = vector.load %arg17[%c0_32, %c0_33] : memref<8x128xf32, #tpu.memory_space<vmem>>, vector<8x128xf32>
    %c0_34 = arith.constant 0 : index
    %c0_35 = arith.constant 0 : index
    %66 = vector.load %arg6[%c0_34, %c0_35] : memref<128x384xf32, #tpu.memory_space<vmem>>, vector<128x384xf32>
    %cst_36 = arith.constant dense<0.000000e+00> : vector<8x384xf32>
    %67 = tpu.matmul %65, %66, %cst_36 {dimension_numbers = #tpu.dot_dimension_numbers<[1], [0], [0], [1], [0, 0, 1, 1], [], []>} : vector<8x128xf32>, vector<128x384xf32>, vector<8x384xf32> -> vector<8x384xf32>
    %c0_37 = arith.constant 0 : index
    %c0_38 = arith.constant 0 : index
    %68 = vector.load %arg11[%c0_37, %c0_38] : memref<1x384xf32, #tpu.memory_space<vmem>>, vector<1x384xf32>
    %69 = vector.broadcast %68 : vector<1x384xf32> to vector<8x384xf32>
    %70 = arith.addf %67, %69 : vector<8x384xf32>
    %71 = vector.extract_strided_slice %64 {offsets = [0, 0], sizes = [8, 256], strides = [1, 1]} : vector<8x384xf32> to vector<8x256xf32>
    %72 = vector.extract_strided_slice %70 {offsets = [0, 0], sizes = [8, 256], strides = [1, 1]} : vector<8x384xf32> to vector<8x256xf32>
    %73 = arith.addf %71, %72 : vector<8x256xf32>
    %74 = arith.negf %73 : vector<8x256xf32>
    %75 = math.exp %74 : vector<8x256xf32>
    %cst_39 = arith.constant 1.000000e+00 : f32
    %76 = vector.broadcast %cst_39 : f32 to vector<8x256xf32>
    %77 = arith.addf %76, %75 : vector<8x256xf32>
    %78 = arith.divf %76, %77 : vector<8x256xf32>
    %79 = vector.extract_strided_slice %78 {offsets = [0, 0], sizes = [8, 128], strides = [1, 1]} : vector<8x256xf32> to vector<8x128xf32>
    %80 = vector.extract_strided_slice %78 {offsets = [0, 128], sizes = [8, 128], strides = [1, 1]} : vector<8x256xf32> to vector<8x128xf32>
    %81 = vector.extract_strided_slice %64 {offsets = [0, 256], sizes = [8, 128], strides = [1, 1]} : vector<8x384xf32> to vector<8x128xf32>
    %82 = vector.extract_strided_slice %70 {offsets = [0, 256], sizes = [8, 128], strides = [1, 1]} : vector<8x384xf32> to vector<8x128xf32>
    %83 = arith.mulf %79, %82 : vector<8x128xf32>
    %84 = arith.addf %81, %83 : vector<8x128xf32>
    %85 = math.tanh %84 : vector<8x128xf32>
    %86 = arith.subf %65, %85 : vector<8x128xf32>
    %87 = arith.mulf %80, %86 : vector<8x128xf32>
    %88 = arith.addf %85, %87 : vector<8x128xf32>
    %c0_40 = arith.constant 0 : index
    %c0_41 = arith.constant 0 : index
    %89 = vector.load %arg17[%c0_40, %c0_41] : memref<8x128xf32, #tpu.memory_space<vmem>>, vector<8x128xf32>
    tpu.vector_store %arg17[%c0_40, %c0_41], %88 {strides = array<i32>} : memref<8x128xf32, #tpu.memory_space<vmem>>, vector<8x128xf32>,
    %c7_i32 = arith.constant 7 : i32
    %90 = arith.cmpi eq, %arg0, %c7_i32 : i32
    %91 = arith.extui %90 : i1 to i32
    %c0_i32_42 = arith.constant 0 : i32
    %92 = arith.cmpi ne, %91, %c0_i32_42 : i32
    scf.if %92 {
      %c0_43 = arith.constant 0 : index
      %c0_44 = arith.constant 0 : index
      %93 = vector.load %arg12[%c0_43, %c0_44] : memref<128x128xf32, #tpu.memory_space<vmem>>, vector<128x128xf32>
      %cst_45 = arith.constant dense<0.000000e+00> : vector<8x128xf32>
      %94 = tpu.matmul %88, %93, %cst_45 {dimension_numbers = #tpu.dot_dimension_numbers<[1], [0], [0], [1], [0, 0, 1, 1], [], []>} : vector<8x128xf32>, vector<128x128xf32>, vector<8x128xf32> -> vector<8x128xf32>
      %c0_46 = arith.constant 0 : index
      %c0_47 = arith.constant 0 : index
      %95 = vector.load %arg13[%c0_46, %c0_47] : memref<1x128xf32, #tpu.memory_space<vmem>>, vector<1x128xf32>
      %96 = vector.broadcast %95 : vector<1x128xf32> to vector<8x128xf32>
      %97 = arith.addf %94, %96 : vector<8x128xf32>
      %98 = arith.mulf %97, %97 : vector<8x128xf32>
      %cst_48 = arith.constant dense<0.000000e+00> : vector<8xf32>
      %99 = vector.multi_reduction <add>, %98, %cst_48 [1] : vector<8x128xf32> to vector<8xf32>
      %100 = vector.shape_cast %99 : vector<8xf32> to vector<8x1xf32>
      %cst_49 = arith.constant 9.99999996E-13 : f32
      %101 = vector.broadcast %cst_49 : f32 to vector<8x1xf32>
      %102 = arith.addf %100, %101 : vector<8x1xf32>
      %103 = math.rsqrt %102 : vector<8x1xf32>
      %104 = vector.broadcast %103 : vector<8x1xf32> to vector<8x128xf32>
      %105 = arith.mulf %97, %104 : vector<8x128xf32>
      %c0_50 = arith.constant 0 : index
      %c0_51 = arith.constant 0 : index
      %106 = vector.load %arg14[%c0_50, %c0_51] : memref<8x128xf32, #tpu.memory_space<vmem>>, vector<8x128xf32>
      tpu.vector_store %arg14[%c0_50, %c0_51], %105 {strides = array<i32>} : memref<8x128xf32, #tpu.memory_space<vmem>>, vector<8x128xf32>,
    } else {
    }
    return
  }
  func.func @transform_0(%arg0: i32) -> (i32, i32, i32) {
    %c0_i32 = arith.constant 0 : i32
    %c0_i32_0 = arith.constant 0 : i32
    %c0_i32_1 = arith.constant 0 : i32
    return %arg0, %c0_i32, %c0_i32_0 : i32, i32, i32
  }
  func.func @transform_1(%arg0: i32) -> (i32, i32) {
    %c0_i32 = arith.constant 0 : i32
    %c0_i32_0 = arith.constant 0 : i32
    %c0_i32_1 = arith.constant 0 : i32
    return %c0_i32, %c0_i32_0 : i32, i32
  }
  func.func @transform_2(%arg0: i32) -> (i32, i32) {
    %c0_i32 = arith.constant 0 : i32
    %c0_i32_0 = arith.constant 0 : i32
    %c0_i32_1 = arith.constant 0 : i32
    return %c0_i32, %c0_i32_0 : i32, i32
  }
  func.func @transform_3(%arg0: i32) -> (i32, i32) {
    %c0_i32 = arith.constant 0 : i32
    %c0_i32_0 = arith.constant 0 : i32
    %c0_i32_1 = arith.constant 0 : i32
    return %c0_i32, %c0_i32_0 : i32, i32
  }
  func.func @transform_4(%arg0: i32) -> (i32, i32) {
    %c0_i32 = arith.constant 0 : i32
    %c0_i32_0 = arith.constant 0 : i32
    %c0_i32_1 = arith.constant 0 : i32
    return %c0_i32, %c0_i32_0 : i32, i32
  }
  func.func @transform_5(%arg0: i32) -> (i32, i32) {
    %c0_i32 = arith.constant 0 : i32
    %c0_i32_0 = arith.constant 0 : i32
    %c0_i32_1 = arith.constant 0 : i32
    return %c0_i32, %c0_i32_0 : i32, i32
  }
  func.func @transform_6(%arg0: i32) -> (i32, i32) {
    %c0_i32 = arith.constant 0 : i32
    %c0_i32_0 = arith.constant 0 : i32
    %c0_i32_1 = arith.constant 0 : i32
    return %c0_i32, %c0_i32_0 : i32, i32
  }
  func.func @transform_7(%arg0: i32) -> (i32, i32) {
    %c0_i32 = arith.constant 0 : i32
    %c0_i32_0 = arith.constant 0 : i32
    %c0_i32_1 = arith.constant 0 : i32
    return %c0_i32, %c0_i32_0 : i32, i32
  }
  func.func @transform_8(%arg0: i32) -> (i32, i32) {
    %c0_i32 = arith.constant 0 : i32
    %c0_i32_0 = arith.constant 0 : i32
    %c0_i32_1 = arith.constant 0 : i32
    return %c0_i32, %c0_i32_0 : i32, i32
  }
  func.func @transform_9(%arg0: i32) -> (i32, i32) {
    %c0_i32 = arith.constant 0 : i32
    %c0_i32_0 = arith.constant 0 : i32
    %c0_i32_1 = arith.constant 0 : i32
    return %c0_i32, %c0_i32_0 : i32, i32
  }
  func.func @transform_10(%arg0: i32) -> (i32, i32) {
    %c0_i32 = arith.constant 0 : i32
    %c0_i32_0 = arith.constant 0 : i32
    %c0_i32_1 = arith.constant 0 : i32
    return %c0_i32, %c0_i32_0 : i32, i32
  }
  func.func @transform_11(%arg0: i32) -> (i32, i32) {
    %c0_i32 = arith.constant 0 : i32
    %c0_i32_0 = arith.constant 0 : i32
    %c0_i32_1 = arith.constant 0 : i32
    return %c0_i32, %c0_i32_0 : i32, i32
  }
  func.func @transform_12(%arg0: i32) -> (i32, i32) {
    %c0_i32 = arith.constant 0 : i32
    %c0_i32_0 = arith.constant 0 : i32
    %c0_i32_1 = arith.constant 0 : i32
    return %c0_i32, %c0_i32_0 : i32, i32
  }
  func.func @transform_13(%arg0: i32) -> (i32, i32) {
    %c0_i32 = arith.constant 0 : i32
    %c0_i32_0 = arith.constant 0 : i32
    %c0_i32_1 = arith.constant 0 : i32
    return %c0_i32, %c0_i32_0 : i32, i32
  }
}

</mosaic_0001>

<bundles_post_ra>
// kernel: speaker_embedder_gru.2
= control target key start
LH: loop header
LB: loop body
LE: loop exit
PB: predicated region body
PF: predicated region fallthrough
CT: control target
= control target key end

     0   :  { %8 = vsyncpa [#allocation3], 0  ;;  %s407_s12 = smov [#allocation2]   ;;  %s591_s0 = inlined_call_operand.vmem [shape: f32[64,16], index: 0, kind: input, shape index: {}]   ;;  %s592_s1 = inlined_call_operand.vmem [shape: f32[16,384], index: 1, kind: input, shape index: {}]   ;;  %s593_s2 = inlined_call_operand.hbm [shape: f32[1,384], index: 2, kind: input, shape index: {}]   ;;  %s594_s3 = inlined_call_operand.vmem [shape: f32[64,384], index: 3, kind: output, shape index: {}]  }
   0x1   :  { %s19_s13 = sshll.u32 %s407_s12, 4  ;;  %s383_s16 = scalar_lea.hbm %s593_s2, 48  ;;  %s20_s13 = int_to_ptr.vmem [resolvable:$true] %s19_s13 }
   0x2   :  { %p384_p0 = scmp.ne.s32.totalorder %s593_s2, %s383_s16  ;;  %p387_p1 = scmp.lt.u32.totalorder %s383_s16, %s593_s2 }
   0x4   :  { %p389_p2 = pnand %p387_p1, %p384_p0 }
   0x6   :  { %392 = shalt.err (!%p389_p2)
}
   0x7   :  { %s393_s21 = scalar_lea.vmem %s20_s13, 48  ;;  %s397_s22 = scalar_lea.vmem %s20_s13, 64 }
   0x8   :  { %p394_p3 = scmp.ne.s32.totalorder %s20_s13, %s393_s21  ;;  %p398_p4 = scmp.lt.s32.totalorder %s20_s13, %s20_s13 }
   0x9   :  { %p399_p5 = scmp.lt.s32.totalorder %s397_s22, %s393_s21 }
   0xb   :  { %p400_p6 = por %p399_p5, %p398_p4 }
   0xd   :  { %p401_p7 = pnand %p400_p6, %p394_p3 }
   0xf   :  { %404 = shalt.err (!%p401_p7)
}
  0x10   :  { %22 = dma.hbm_to_vmem [thread:$0]  %s593_s2, 48, %s20_s13, [#allocation3]  }
  0x11   :  { %405 = dma.done.wait [#allocation3], 48  }
  0x12   :  { %406 = vsyncadd [#allocation3], 4294967248  ;;  %v408_v0 = vmov 0.0   ;;  %v35_v1 = vld [vmem:[%s592_s1 + $0x8] sm:$0xff]  ;;  %v38_v2 = vld [vmem:[%s592_s1 + $0x20] sm:$0xff]  ;;  %vm57_vm0 = vcmask 130048   ;;  %v42_v18 = vlaneseq }
  0x13   :  { %146 = vmatprep.mubr.f32.mxu0 %v408_v0  ;;  %182 = vmatprep.mubr.f32.mxu1 %v408_v0  ;;  %v34_v3 = vld [vmem:[%s592_s1] sm:$0xff]  ;;  %v371_v4 = vpack.c.bf16 %v38_v2, %v35_v1  ;;  %v37_v5 = vld [vmem:[%s592_s1 + $0x18] sm:$0xff]  ;;  %v36_v7 = vld [vmem:[%s592_s1 + $0x10] sm:$0xff] }
  0x14   :  { %v373_v6 = vpack.c.bf16 %v37_v5, %v34_v3  ;;  %v39_v8 = vld [vmem:[%s592_s1 + $0x28] sm:$0xff]  ;;  %v26_v10 = vld [vmem:[%s591_s0] sm:$0xff]  ;;  %v32_v11 = vld [vmem:[%s591_s0 + $0x30] sm:$0xff]  ;;  %v43_v19 = vshrl.u32 %v42_v18, 7 }
  0x15   :  { %372 = vmatprep.subr.bf16.mxu0 %v371_v4  ;;  %379 = vmatprep.subr.bf16.mxu1 %v371_v4  ;;  %v375_v9 = vpack.c.bf16 %v39_v8, %v36_v7  ;;  %v27_v12 = vld [vmem:[%s591_s0 + $0x8] sm:$0xff]  ;;  %v33_v13 = vld [vmem:[%s591_s0 + $0x38] sm:$0xff]  ;;  %v28_v14 = vld [vmem:[%s591_s0 + $0x10] sm:$0xff] }
  0x16   :  { %374 = vmatpush1.bf16.msra.mxu0 %v373_v6  ;;  %380 = vmatpush1.bf16.msra.mxu1 %v373_v6  ;;  %v29_v15 = vld [vmem:[%s591_s0 + $0x18] sm:$0xff]  ;;  %v30_v16 = vld [vmem:[%s591_s0 + $0x20] sm:$0xff]  ;;  %v31_v17 = vld [vmem:[%s591_s0 + $0x28] sm:$0xff]  ;;  %v44_v20 = vsub.s32 0, %v43_v19  ;;  %v48_v22 = vsub.s32 1, %v43_v19  ;;  %v52_v31 = vsub.s32 2, %v43_v19 }
  0x17   :  { %376 = vmatprep.subr.bf16.mxu1 %v375_v9  ;;  %v40_v21 = vld [vmem:[#allocation2] sm:$0x7] }
  0x18   :  { %v499_v23 = vrot.slane %v40_v21, %v44_v20  ;;  %v501_v24 = vrot.slane %v40_v21, %v48_v22  ;;  %v53_v40 = vrot.slane %v40_v21, %v52_v31 }
  0x19   :  { %329 = vmatmul.mubr.msk.f32.vlgmr.msra.gmra.mrb[0].mxu0 %vm57_vm0, %v26_v10  ;;  %335 = vmatmul.mubr.msk.f32.vlgmr.msra.gmra.mrb[0].mxu1 %vm57_vm0, %v32_v11 }
  0x1a   :  { %378 = vmatpush3.bf16.msra.mxu1 %v375_v9  ;;  %152 = vmatprep.mubr.f32.mxu0 %v408_v0 }
  0x1b   :  { %188 = vmatprep.mubr.f32.mxu1 %v408_v0 }
  0x1d   :  { %330 = vmatmul.mubr.msk.f32.gmra.mrb[2].mxu0 %vm57_vm0, %v27_v12  ;;  %336 = vmatmul.mubr.msk.f32.gmra.mrb[2].mxu1 %vm57_vm0, %v33_v13 }
  0x1e   :  { %158 = vmatprep.mubr.f32.mxu0 %v408_v0  ;;  %359 = vmatprep.mubr.msk.f32.mxu1 %vm57_vm0, %v26_v10 }
  0x21   :  { %331 = vmatmul.mubr.msk.f32.gmra.mrb[4].mxu0 %vm57_vm0, %v28_v14  ;;  %360 = vmatmul.mubr.msk.f32.vlgmr.msra.gmra.mrb[4].mxu1 %vm57_vm0, %v27_v12 }
  0x22   :  { %164 = vmatprep.mubr.f32.mxu0 %v408_v0  ;;  %362 = vmatprep.mubr.msk.f32.mxu1 %vm57_vm0, %v28_v14 }
  0x25   :  { %332 = vmatmul.mubr.msk.f32.gmra.mrb[6].mxu0 %vm57_vm0, %v29_v15  ;;  %363 = vmatmul.mubr.msk.f32.gmra.mrb[6].mxu1 %vm57_vm0, %v29_v15 }
  0x26   :  { %170 = vmatprep.mubr.f32.mxu0 %v408_v0  ;;  %365 = vmatprep.mubr.msk.f32.mxu1 %vm57_vm0, %v30_v16 }
  0x29   :  { %333 = vmatmul.mubr.msk.f32.gmra.mrb[8].mxu0 %vm57_vm0, %v30_v16  ;;  %366 = vmatmul.mubr.msk.f32.gmra.mrb[8].mxu1 %vm57_vm0, %v31_v17 }
  0x2a   :  { %176 = vmatprep.mubr.f32.mxu0 %v408_v0  ;;  %368 = vmatprep.mubr.msk.f32.mxu1 %vm57_vm0, %v32_v11 }
  0x2d   :  { %334 = vmatmul.mubr.msk.f32.gmra.mrb[10].mxu0 %vm57_vm0, %v31_v17  ;;  %369 = vmatmul.mubr.msk.f32.gmra.mrb[10].mxu1 %vm57_vm0, %v33_v13 }
  0xec   :  { %v148_v25 = vpop.f32.mrb[0].mxu0  ;;  %v184_v26 = vpop.f32.mrb[0].mxu1 }
  0xed   :  { %v149_v27 = vadd.f32 %v148_v25, %v499_v23  ;;  %v185_v28 = vadd.f32 %v184_v26, %v499_v23  ;;  %v150_v29 = vpop.f32.mrb[1].mxu0  ;;  %v186_v30 = vpop.f32.mrb[1].mxu1 }
  0xee   :  { %v151_v32 = vadd.f32 %v150_v29, %v501_v24  ;;  %v187_v33 = vadd.f32 %v186_v30, %v501_v24 }
  0xef   :  { %300 = vst [vmem:[%s594_s3] sm:$0xff] %v149_v27  ;;  %318 = vst [vmem:[%s594_s3 + $0x90] sm:$0xff] %v185_v28 }
  0xf0   :  { %301 = vst [vmem:[%s594_s3 + $0x8] sm:$0xff] %v151_v32  ;;  %319 = vst [vmem:[%s594_s3 + $0x98] sm:$0xff] %v187_v33  ;;  %v154_v34 = vpop.f32.mrb[2].mxu0  ;;  %v190_v35 = vpop.f32.mrb[2].mxu1 }
  0xf1   :  { %v155_v36 = vadd.f32 %v154_v34, %v499_v23  ;;  %v191_v37 = vadd.f32 %v190_v35, %v499_v23  ;;  %v156_v38 = vpop.f32.mrb[3].mxu0  ;;  %v192_v39 = vpop.f32.mrb[3].mxu1 }
  0xf2   :  { %v157_v41 = vadd.f32 %v156_v38, %v501_v24  ;;  %v193_v42 = vadd.f32 %v192_v39, %v501_v24 }
  0xf3   :  { %303 = vst [vmem:[%s594_s3 + $0x18] sm:$0xff] %v155_v36  ;;  %321 = vst [vmem:[%s594_s3 + $0xa8] sm:$0xff] %v191_v37 }
  0xf4   :  { %304 = vst [vmem:[%s594_s3 + $0x20] sm:$0xff] %v157_v41  ;;  %322 = vst [vmem:[%s594_s3 + $0xb0] sm:$0xff] %v193_v42  ;;  %v160_v43 = vpop.f32.mrb[4].mxu0  ;;  %v361_v44 = vpop.f32.mrb[4].mxu1 }
  0xf5   :  { %v161_v45 = vadd.f32 %v160_v43, %v499_v23  ;;  %v267_v46 = vadd.f32 %v361_v44, %v53_v40  ;;  %v162_v47 = vpop.f32.mrb[5].mxu0  ;;  %v261_v48 = vpop.f32.mrb[5].mxu1 }
  0xf6   :  { %v163_v49 = vadd.f32 %v162_v47, %v501_v24  ;;  %v262_v50 = vadd.f32 %v261_v48, %v53_v40 }
  0xf7   :  { %306 = vst [vmem:[%s594_s3 + $0x30] sm:$0xff] %v161_v45  ;;  %305 = vst [vmem:[%s594_s3 + $0x28] sm:$0xff] %v267_v46 }
  0xf8   :  { %307 = vst [vmem:[%s594_s3 + $0x38] sm:$0xff] %v163_v49  ;;  %302 = vst [vmem:[%s594_s3 + $0x10] sm:$0xff] %v262_v50  ;;  %v166_v51 = vpop.f32.mrb[6].mxu0  ;;  %v364_v52 = vpop.f32.mrb[6].mxu1 }
  0xf9   :  { %v167_v53 = vadd.f32 %v166_v51, %v499_v23  ;;  %v277_v54 = vadd.f32 %v364_v52, %v53_v40  ;;  %v168_v55 = vpop.f32.mrb[7].mxu0  ;;  %v271_v56 = vpop.f32.mrb[7].mxu1 }
  0xfa   :  { %v169_v57 = vadd.f32 %v168_v55, %v501_v24  ;;  %v272_v58 = vadd.f32 %v271_v56, %v53_v40 }
  0xfb   :  { %309 = vst [vmem:[%s594_s3 + $0x48] sm:$0xff] %v167_v53  ;;  %311 = vst [vmem:[%s594_s3 + $0x58] sm:$0xff] %v277_v54 }
  0xfc   :  { %310 = vst [vmem:[%s594_s3 + $0x50] sm:$0xff] %v169_v57  ;;  %308 = vst [vmem:[%s594_s3 + $0x40] sm:$0xff] %v272_v58  ;;  %v172_v59 = vpop.f32.mrb[8].mxu0  ;;  %v367_v60 = vpop.f32.mrb[8].mxu1 }
  0xfd   :  { %v173_v61 = vadd.f32 %v172_v59, %v499_v23  ;;  %v287_v62 = vadd.f32 %v367_v60, %v53_v40  ;;  %v174_v63 = vpop.f32.mrb[9].mxu0  ;;  %v281_v0 = vpop.f32.mrb[9].mxu1 }
  0xfe   :  { %v175_v1 = vadd.f32 %v174_v63, %v501_v24  ;;  %v282_v2 = vadd.f32 %v281_v0, %v53_v40 }
  0xff   :  { %312 = vst [vmem:[%s594_s3 + $0x60] sm:$0xff] %v173_v61  ;;  %317 = vst [vmem:[%s594_s3 + $0x88] sm:$0xff] %v287_v62 }
 0x100   :  { %313 = vst [vmem:[%s594_s3 + $0x68] sm:$0xff] %v175_v1  ;;  %314 = vst [vmem:[%s594_s3 + $0x70] sm:$0xff] %v282_v2  ;;  %v178_v3 = vpop.f32.mrb[10].mxu0  ;;  %v370_v4 = vpop.f32.mrb[10].mxu1 }
 0x101   :  { %v179_v5 = vadd.f32 %v178_v3, %v499_v23  ;;  %v297_v6 = vadd.f32 %v370_v4, %v53_v40  ;;  %v180_v7 = vpop.f32.mrb[11].mxu0  ;;  %v291_v8 = vpop.f32.mrb[11].mxu1 }
 0x102   :  { %v181_v9 = vadd.f32 %v180_v7, %v501_v24  ;;  %v292_v10 = vadd.f32 %v291_v8, %v53_v40 }
 0x103   :  { %315 = vst [vmem:[%s594_s3 + $0x78] sm:$0xff] %v179_v5  ;;  %323 = vst [vmem:[%s594_s3 + $0xb8] sm:$0xff] %v297_v6 }
 0x104   :  { %316 = vst [vmem:[%s594_s3 + $0x80] sm:$0xff] %v181_v9  ;;  %320 = vst [vmem:[%s594_s3 + $0xa0] sm:$0xff] %v292_v10 }
 0x105   :  { %328 = vsyncpa [#allocation3], 1 }

// kernel: speaker_embedder_gru.3
= control target key start
LH: loop header
LB: loop body
LE: loop exit
PB: predicated region body
PF: predicated region fallthrough
CT: control target
= control target key end

     0   :  { %s3227_s0 = inlined_call_operand.vmem [shape: f32[8,8,384], index: 0, kind: input, shape index: {}]   ;;  %s3228_s1 = inlined_call_operand.vmem [shape: f32[128,384], index: 1, kind: input, shape index: {}]   ;;  %s3229_s2 = inlined_call_operand.hbm [shape: f32[128,384], index: 2, kind: input, shape index: {}]   ;;  %s3230_s3 = inlined_call_operand.hbm [shape: f32[128,384], index: 3, kind: input, shape index: {}]   ;;  %s3231_s4 = inlined_call_operand.hbm [shape: f32[128,384], index: 4, kind: input, shape index: {}]   ;;  %s3232_s5 = inlined_call_operand.hbm [shape: f32[128,384], index: 5, kind: input, shape index: {}]   ;;  %s3233_s6 = inlined_call_operand.vmem [shape: f32[1,384], index: 6, kind: input, shape index: {}]   ;;  %s3234_s7 = inlined_call_operand.vmem [shape: f32[1,384], index: 7, kind: input, shape index: {}]   ;;  %s3235_s8 = inlined_call_operand.vmem [shape: f32[1,384], index: 8, kind: input, shape index: {}]   ;;  %s3236_s9 = inlined_call_operand.vmem [shape: f32[1,384], index: 9, kind: input, shape index: {}]   ;;  %s3237_s10 = inlined_call_operand.vmem [shape: f32[1,384], index: 10, kind: input, shape index: {}]   ;;  %s3238_s11 = inlined_call_operand.hbm [shape: f32[128,128], index: 11, kind: input, shape index: {}]   ;;  %s3239_s12 = inlined_call_operand.vmem [shape: f32[1,128], index: 12, kind: input, shape index: {}]   ;;  %s3240_s13 = inlined_call_operand.vmem [shape: f32[8,128], index: 13, kind: output, shape index: {}]  }
   0x1   :  { %3244 = sst [smem:[#allocation17_spill]] %s3239_s12 }
   0x2   :  { %3245 = sst [smem:[#allocation18_spill]] %s3240_s13 }
   0x3   :  { %18 = vsyncpa [#allocation6], 0 }
   0x4   :  { %19 = vsyncpa [#allocation8], 0 }
   0x5   :  { %20 = vsyncpa [#allocation11], 0  ;;  %s2790_s25 = smov 0  }
   0x6 LB: > { %3246 = sst [smem:[#allocation16_spill]] %s2702_s25  ;;  %s2796_s26 = sadd.s32 4294967295, %s2702_s25   ;;  %s2702_s25 = sphi %s2790_s25, %s26_s25  }
   0x7   : > { %p1788_p0 = scmp.ge.s32.totalorder %s2702_s25, 1  ;;  %p330_p1 = scmp.lt.s32.totalorder %s2702_s25, 9 }
   0x8   : > { %p3242_p3 = scmp.eq.s32.totalorder %s2796_s26, 0  ;;  %s2704_s28 = smov [#allocation7]  }
   0x9   : > { %p2802_p4 = pnand %p1788_p0, %p330_p1  ;;  %s358_s29 = sshll.u32 %s2704_s28, 4  ;;  %s2806_s29 = int_to_ptr.vmem [resolvable:$true] %s358_s29 }
   0xa   : > { %s2705_s30 = smov [#allocation10]   ;;  %s2706_s16 = smov [#allocation5]  }
   0xb   : > { %s3247_s27 = scalar_select %p2802_p4, 1, 0 }
   0xc   : > { %p2462_p5 = pneg %p2802_p4  ;;  %s384_s14 = sshll.u32 %s2705_s30, 4  ;;  %s2810_s14 = int_to_ptr.vmem [resolvable:$true] %s384_s14 }
   0xd   : > { %s345_s17 = sshll.u32 %s2706_s16, 4  ;;  %s2707_s18 = smov [#allocation9]   ;;  %s2818_s17 = int_to_ptr.vmem [resolvable:$true] %s345_s17 }
   0xe   : > { %p2814_p6 = pnand %p3242_p3, %p2462_p5  ;;  %s2820_s19 = sshll.u32 %s2707_s18, 4  ;;  %s372_s19 = int_to_ptr.vmem [resolvable:$true] %s2820_s19 }
   0xf   : > { %s2544_s22 = scalar_lea.hbm %s3230_s3, 6144 }
  0x10   : > { %p2545_p7 = scmp.ne.s32.totalorder %s3230_s3, %s2544_s22  ;;  %p2830_p8 = pneg %p2814_p6 }
  0x11   : > { %p2551_p11 = scmp.lt.u32.totalorder %s2544_s22, %s3230_s3 }
  0x12   : > { %p2547_p9 = pnand %p2830_p8, %p2545_p7 }
  0x14   : > { %p2548_p10 = pneg %p2547_p9 }
  0x16   : > { %p2553_p12 = pnand %p2551_p11, %p2548_p10 }
  0x18   : > { %2556 = shalt.err (!%p2553_p12)
}
  0x19   : > { %s2557_s18 = scalar_lea.vmem %s2806_s29, 6144  ;;  %p2565_p5 = scmp.lt.s32.totalorder %s2806_s29, %s2806_s29 }
  0x1a   : > { %p2558_p13 = scmp.ne.s32.totalorder %s2806_s29, %s2557_s18  ;;  %p2566_p2 = scmp.lt.s32.totalorder %s2557_s18, %s2557_s18 }
  0x1c   : > { %p2560_p0 = pnand %p2558_p13, %p2830_p8  ;;  %p2567_p7 = por %p2566_p2, %p2565_p5 }
  0x1e   : > { %p2561_p1 = pneg %p2560_p0 }
  0x20   : > { %p2568_p9 = pnand %p2567_p7, %p2561_p1 }
  0x22   : > { %2571 = shalt.err (!%p2568_p9)
}
  0x23   : > { %s2708_s20 = smov 384   ;;  %s2709_s21 = smov 24  }
  0x24   : > { %2468 = dma.hbm_to_vmem [thread:$0]  (!%p2814_p6), %s3230_s3, 6144, %s2806_s29, [#allocation8], %s2708_s20, %s2708_s20, %s2709_s21  }
  0x25   : > { %s2572_s16 = scalar_lea.hbm %s3232_s5, 6144 }
  0x26   : > { %p2573_p2 = scmp.ne.s32.totalorder %s3232_s5, %s2572_s16  ;;  %p2579_p12 = scmp.lt.u32.totalorder %s2572_s16, %s3232_s5 }
  0x28   : > { %p2575_p10 = pnand %p2573_p2, %p2830_p8 }
  0x2a   : > { %p2576_p11 = pneg %p2575_p10 }
  0x2c   : > { %p2581_p13 = pnand %p2579_p12, %p2576_p11 }
  0x2e   : > { %2584 = shalt.err (!%p2581_p13)
}
  0x2f   : > { %s2585_s29 = scalar_lea.vmem %s2810_s14, 6144  ;;  %p2593_p7 = scmp.lt.s32.totalorder %s2810_s14, %s2810_s14 }
  0x30   : > { %p2586_p0 = scmp.ne.s32.totalorder %s2810_s14, %s2585_s29  ;;  %p2594_p9 = scmp.lt.s32.totalorder %s2585_s29, %s2585_s29 }
  0x32   : > { %p2588_p1 = pnand %p2586_p0, %p2830_p8  ;;  %p2595_p2 = por %p2594_p9, %p2593_p7 }
  0x34   : > { %p2589_p5 = pneg %p2588_p1 }
  0x36   : > { %p2596_p10 = pnand %p2595_p2, %p2589_p5 }
  0x38   : > { %2599 = shalt.err (!%p2596_p10)
}
  0x39   : > { %2474 = dma.hbm_to_vmem [thread:$0]  (!%p2814_p6), %s3232_s5, 6144, %s2810_s14, [#allocation11], %s2708_s20, %s2708_s20, %s2709_s21  }
  0x3a   : > { %s2600_s23 = scalar_lea.hbm %s3229_s2, 6144 }
  0x3b   : > { %p2601_p11 = scmp.ne.s32.totalorder %s3229_s2, %s2600_s23  ;;  %p2607_p0 = scmp.lt.u32.totalorder %s2600_s23, %s3229_s2 }
  0x3d   : > { %p2603_p12 = pnand %p2601_p11, %p2830_p8 }
  0x3f   : > { %p2604_p13 = pneg %p2603_p12 }
  0x41   : > { %p2609_p1 = pnand %p2607_p0, %p2604_p13 }
  0x43   : > { %2612 = shalt.err (!%p2609_p1)
}
  0x44   : > { %s2613_s14 = scalar_lea.vmem %s2818_s17, 6144  ;;  %p2621_p2 = scmp.lt.s32.totalorder %s2818_s17, %s2818_s17 }
  0x45   : > { %p2614_p5 = scmp.ne.s32.totalorder %s2818_s17, %s2613_s14  ;;  %p2622_p10 = scmp.lt.s32.totalorder %s2613_s14, %s2613_s14 }
  0x47   : > { %p2616_p7 = pnand %p2614_p5, %p2830_p8  ;;  %p2623_p11 = por %p2622_p10, %p2621_p2 }
  0x49   : > { %p2617_p9 = pneg %p2616_p7 }
  0x4b   : > { %p2624_p12 = pnand %p2623_p11, %p2617_p9 }
  0x4d   : > { %2627 = shalt.err (!%p2624_p12)
}
  0x4e   : > { %2465 = dma.hbm_to_vmem [thread:$0]  (!%p2814_p6), %s3229_s2, 6144, %s2818_s17, [#allocation6], %s2708_s20, %s2708_s20, %s2709_s21  }
  0x4f   : > { %s2628_s22 = scalar_lea.hbm %s3231_s4, 6144 }
  0x50   : > { %p2629_p13 = scmp.ne.s32.totalorder %s3231_s4, %s2628_s22  ;;  %p2635_p5 = scmp.lt.u32.totalorder %s2628_s22, %s3231_s4 }
  0x52   : > { %p2631_p0 = pnand %p2629_p13, %p2830_p8 }
  0x54   : > { %p2632_p1 = pneg %p2631_p0 }
  0x56   : > { %p2637_p7 = pnand %p2635_p5, %p2632_p1 }
  0x58   : > { %2640 = shalt.err (!%p2637_p7)
}
  0x59   : > { %s2641_s18 = scalar_lea.vmem %s372_s19, 6144  ;;  %p2649_p11 = scmp.lt.s32.totalorder %s372_s19, %s372_s19 }
  0x5a   : > { %p2642_p9 = scmp.ne.s32.totalorder %s372_s19, %s2641_s18  ;;  %p2650_p12 = scmp.lt.s32.totalorder %s2641_s18, %s2641_s18 }
  0x5c   : > { %p2644_p2 = pnand %p2642_p9, %p2830_p8  ;;  %p2651_p3 = por %p2650_p12, %p2649_p11 }
  0x5e   : > { %p2645_p10 = pneg %p2644_p2 }
  0x60   : > { %p2652_p4 = pnand %p2651_p3, %p2645_p10 }
  0x62   : > { %2655 = shalt.err (!%p2652_p4)
}
  0x63   : > { %2471 = dma.hbm_to_vmem [thread:$0]  (!%p2814_p6), %s3231_s4, 6144, %s372_s19, [#allocation8], %s2708_s20, %s2708_s20, %s2709_s21  }
  0x64   : > { %s2710_s29 = smov [#allocation12]   ;;  %s2656_s22 = scalar_lea.hbm %s3238_s11, 2048 }
  0x65   : > { %s412_s12 = sshll.u32 %s2710_s29, 4  ;;  %p2657_p3 = scmp.ne.s32.totalorder %s3238_s11, %s2656_s22  ;;  %s413_s12 = int_to_ptr.vmem [resolvable:$true] %s412_s12 }
  0x66   : > { %p2663_p0 = scmp.lt.u32.totalorder %s2656_s22, %s3238_s11 }
  0x67   : > { %p2659_p4 = pnand %p2657_p3, %p2830_p8 }
  0x69   : > { %p2660_p13 = pneg %p2659_p4 }
  0x6b   : > { %p2665_p1 = pnand %p2663_p0, %p2660_p13 }
  0x6d   : > { %2668 = shalt.err (!%p2665_p1)
}
  0x6e   : > { %s2669_s19 = scalar_lea.vmem %s413_s12, 2048  ;;  %p2677_p2 = scmp.lt.s32.totalorder %s413_s12, %s413_s12 }
  0x6f   : > { %p2670_p5 = scmp.ne.s32.totalorder %s413_s12, %s2669_s19  ;;  %p2678_p10 = scmp.lt.s32.totalorder %s2669_s19, %s2669_s19 }
  0x71   : > { %p2672_p7 = pnand %p2670_p5, %p2830_p8  ;;  %p2679_p11 = por %p2678_p10, %p2677_p2 }
  0x73   : > { %p2673_p9 = pneg %p2672_p7 }
  0x75   : > { %p2680_p12 = pnand %p2679_p11, %p2673_p9 }
  0x77   : > { %2683 = shalt.err (!%p2680_p12)
}
  0x78   : > { %s2711_s20 = smov 128   ;;  %s2712_s21 = smov 8  }
  0x79   : > { %2477 = dma.hbm_to_vmem [thread:$0]  (!%p2814_p6), %s3238_s11, 2048, %s413_s12, [#allocation11], %s2711_s20, %s2711_s20, %s2712_s21  }
  0x7a   : > { %p3250_p3 = scmp.ne.s32.totalorder %s3247_s27, 0 }
  0x7b   : > { %p3251_p4 = scmp.eq.s32.totalorder (!%p3250_p3), %s2796_s26, 0 }
  0x7c   : > { %439 = sbr.rel (%p3250_p3) target bundleno = 1407 (0x57f), region = 72 }
  0x83   : > { %2689 = dma.done.wait (%p3251_p4), [#allocation6], 6144   ;;  %p3252_p8 = pmov %p3251_p4 }
  0x84   : > { %p3253_p13 = pmov %p3251_p4 }
  0x85   : > { %2691 = vsyncadd (%p3252_p8), [#allocation6], 4294961152 }
  0x86   : > { %2693 = dma.done.wait (%p3253_p13), [#allocation8], 12288   ;;  %p3254_p0 = pmov %p3251_p4 }
  0x88   : > { %2695 = vsyncadd (%p3254_p0), [#allocation8], 4294955008  ;;  %p3255_p1 = pmov %p3254_p0 }
  0x89   : > { %p3256_p6 = pmov %p3254_p0 }
  0x8a   : > { %2697 = dma.done.wait (%p3255_p1), [#allocation11], 8192  }
  0x8b   : > { %2699 = vsyncadd (%p3256_p6), [#allocation11], 4294959104  ;;  %p494_p5 = scmp.lt.s32.totalorder %s2796_s26, 7  ;;  %p3257_p7 = scmp.ne.s32.totalorder %s2796_s26, 0 }
  0x8c   : > { %v2713_v0 = vmov (!%p3257_p7), 0.0  }
  0x8d   : > { %s495_s27 = scalar_select %p494_p5, %s2796_s26, 7 }
  0x8e   : > { %502 = sbr.rel (%p3257_p7) target bundleno = 149 (0x95), region = 96  ;;  %503 = vst [vmem:[#allocation2] sm:$0xff] (!%p3257_p7), %v2713_v0  ;;  %504 = vst [vmem:[#allocation3] sm:$0xff] (!%p3257_p7), %v2713_v0 }
  0x8f   : > { %s2441_s15 = smul.u32 24, %s495_s27  ;;  %505 = vst [vmem:[#allocation4] sm:$0xff] (!%p3257_p7), %v2713_v0 }
  0x91   : > { %s2965_s29 = scalar_lea.vmem %s3227_s0, %s2441_s15 }
  0x95 PF: > { %v511_v1 = vld [vmem:[%s3228_s1 + $0x8] sm:$0xff]  ;;  %v514_v2 = vld [vmem:[%s3228_s1 + $0x20] sm:$0xff]  ;;  %v513_v5 = vld [vmem:[%s3228_s1 + $0x18] sm:$0xff]  ;;  %v2714_v8 = vmov 0.0|0.0   ;;  %v2715_v9 = vmov 0.0   ;;  %vm2716_vm0 = vmmov 0  }
  0x96   : > { %v510_v3 = vld [vmem:[%s3228_s1] sm:$0xff]  ;;  %v2125_v4 = vpack.c.bf16 %v514_v2, %v511_v1  ;;  %v517_v6 = vld [vmem:[%s3228_s1 + $0x38] sm:$0xff]  ;;  %v520_v7 = vld [vmem:[%s3228_s1 + $0x50] sm:$0xff]  ;;  %2157 = vmatprep.subr.bf16.mxu1 %v2714_v8  ;;  %639 = vmatprep.mubr.f32.mxu0 %v2715_v9  ;;  %p1809_p9 = scmp.ne.s32.totalorder %s2796_s26, 7 }
  0x97   : > { %v2127_v10 = vpack.c.bf16 %v513_v5, %v510_v3  ;;  %v2129_v11 = vpack.c.bf16 %v520_v7, %v517_v6  ;;  %v516_v12 = vld [vmem:[%s3228_s1 + $0x30] sm:$0xff]  ;;  %v519_v13 = vld [vmem:[%s3228_s1 + $0x48] sm:$0xff]  ;;  %1947 = vmatprep.mubr.msk.f32.mxu1 %vm2716_vm0, %v2715_v9  ;;  %v526_v15 = vld [vmem:[%s3228_s1 + $0x80] sm:$0xff]  ;;  %vm2718_vm1 = vmmov (!%p1809_p9), 0   ;;  %s3258_s23 = sld [smem:[#allocation17_spill]] (!%p1809_p9)  ;;  %s3259_s16 = sld [smem:[#allocation18_spill]] (!%p1809_p9) }
  0x98   : > { %v523_v14 = vld [vmem:[%s3228_s1 + $0x68] sm:$0xff]  ;;  %2126 = vmatprep.subr.bf16.mxu0 %v2125_v4  ;;  %v2131_v16 = vpack.c.bf16 %v519_v13, %v516_v12  ;;  %v522_v18 = vld [vmem:[%s3228_s1 + $0x60] sm:$0xff]  ;;  %v525_v19 = vld [vmem:[%s3228_s1 + $0x78] sm:$0xff] }
  0x99   : > { %2128 = vmatpush1.bf16.msra.mxu0 %v2127_v10  ;;  %v2133_v17 = vpack.c.bf16 %v526_v15, %v523_v14  ;;  %v529_v20 = vld [vmem:[%s3228_s1 + $0x98] sm:$0xff]  ;;  %v532_v21 = vld [vmem:[%s3228_s1 + $0xb0] sm:$0xff]  ;;  %v2135_v22 = vpack.c.bf16 %v525_v19, %v522_v18  ;;  %v531_v25 = vld [vmem:[%s3228_s1 + $0xa8] sm:$0xff] }
  0x9a   : > { %2130 = vmatprep.subr.bf16.mxu0 %v2129_v11  ;;  %v2137_v23 = vpack.c.bf16 %v532_v21, %v529_v20  ;;  %v528_v24 = vld [vmem:[%s3228_s1 + $0x90] sm:$0xff]  ;;  %v535_v26 = vld [vmem:[%s3228_s1 + $0xc8] sm:$0xff]  ;;  %v538_v27 = vld [vmem:[%s3228_s1 + $0xe0] sm:$0xff] }
  0x9b   : > { %v512_v28 = vld [vmem:[%s3228_s1 + $0x10] sm:$0xff]  ;;  %v515_v29 = vld [vmem:[%s3228_s1 + $0x28] sm:$0xff]  ;;  %v518_v31 = vld [vmem:[%s3228_s1 + $0x40] sm:$0xff]  ;;  %v2139_v32 = vpack.c.bf16 %v531_v25, %v528_v24  ;;  %v2141_v34 = vpack.c.bf16 %v538_v27, %v535_v26 }
  0x9c   : > { %v2158_v30 = vpack.c.bf16 %v515_v29, %v512_v28  ;;  %v521_v33 = vld [vmem:[%s3228_s1 + $0x58] sm:$0xff]  ;;  %v534_v35 = vld [vmem:[%s3228_s1 + $0xc0] sm:$0xff]  ;;  %v544_v39 = vld [vmem:[%s3228_s1 + $0x110] sm:$0xff] }
  0x9d   : > { %2132 = vmatpush1.bf16.msra.mxu0 %v2131_v16  ;;  %v537_v36 = vld [vmem:[%s3228_s1 + $0xd8] sm:$0xff]  ;;  %v2161_v38 = vpack.c.bf16 %v521_v33, %v518_v31  ;;  %v524_v40 = vld [vmem:[%s3228_s1 + $0x70] sm:$0xff]  ;;  %v527_v41 = vld [vmem:[%s3228_s1 + $0x88] sm:$0xff] }
  0x9e   : > { %2134 = vmatprep.subr.bf16.mxu0 %v2133_v17  ;;  %v541_v37 = vld [vmem:[%s3228_s1 + $0xf8] sm:$0xff]  ;;  %2159 = vmatpush3.bf16.msra.mxu1 %v2158_v30  ;;  %v2143_v42 = vpack.c.bf16 %v537_v36, %v534_v35  ;;  %v540_v44 = vld [vmem:[%s3228_s1 + $0xf0] sm:$0xff]  ;;  %v543_v45 = vld [vmem:[%s3228_s1 + $0x108] sm:$0xff]  ;;  %v2164_v47 = vpack.c.bf16 %v527_v41, %v524_v40 }
  0x9f   : > { %2160 = vmatprep.subr.bf16.mxu1 %v2714_v8  ;;  %v2145_v43 = vpack.c.bf16 %v544_v39, %v541_v37  ;;  %v547_v46 = vld [vmem:[%s3228_s1 + $0x128] sm:$0xff]  ;;  %v550_v48 = vld [vmem:[%s3228_s1 + $0x140] sm:$0xff]  ;;  %v533_v50 = vld [vmem:[%s3228_s1 + $0xb8] sm:$0xff]  ;;  %v2147_v51 = vpack.c.bf16 %v543_v45, %v540_v44 }
  0xa0   : > { %v530_v49 = vld [vmem:[%s3228_s1 + $0xa0] sm:$0xff]  ;;  %v2149_v52 = vpack.c.bf16 %v550_v48, %v547_v46  ;;  %v549_v54 = vld [vmem:[%s3228_s1 + $0x138] sm:$0xff]  ;;  %v556_v57 = vld [vmem:[%s3228_s1 + $0x170] sm:$0xff] }
  0xa1   : > { %2136 = vmatpush1.bf16.msra.mxu0 %v2135_v22  ;;  %v546_v53 = vld [vmem:[%s3228_s1 + $0x120] sm:$0xff]  ;;  %v553_v55 = vld [vmem:[%s3228_s1 + $0x158] sm:$0xff]  ;;  %v2167_v56 = vpack.c.bf16 %v533_v50, %v530_v49  ;;  %v536_v58 = vld [vmem:[%s3228_s1 + $0xd0] sm:$0xff] }
  0xa2   : > { %2138 = vmatprep.subr.bf16.mxu0 %v2137_v23  ;;  %2162 = vmatpush3.bf16.msra.mxu1 %v2161_v38  ;;  %v539_v59 = vld [vmem:[%s3228_s1 + $0xe8] sm:$0xff]  ;;  %v2151_v60 = vpack.c.bf16 %v549_v54, %v546_v53  ;;  %v2153_v61 = vpack.c.bf16 %v556_v57, %v553_v55  ;;  %v552_v62 = vld [vmem:[%s3228_s1 + $0x150] sm:$0xff]  ;;  %v542_v1 = vld [vmem:[%s3228_s1 + $0x100] sm:$0xff] }
  0xa3   : > { %2163 = vmatprep.subr.bf16.mxu1 %v2714_v8  ;;  %v555_v63 = vld [vmem:[%s3228_s1 + $0x168] sm:$0xff]  ;;  %v2170_v0 = vpack.c.bf16 %v539_v59, %v536_v58  ;;  %v545_v2 = vld [vmem:[%s3228_s1 + $0x118] sm:$0xff]  ;;  %v548_v5 = vld [vmem:[%s3228_s1 + $0x130] sm:$0xff] }
  0xa4   : > { %v2155_v3 = vpack.c.bf16 %v555_v63, %v552_v62  ;;  %v2173_v4 = vpack.c.bf16 %v545_v2, %v542_v1  ;;  %v551_v6 = vld [vmem:[%s3228_s1 + $0x148] sm:$0xff]  ;;  %v3116_v7 = vld [vmem:[#allocation2] sm:$0xff]  ;;  %v557_v12 = vld [vmem:[%s3228_s1 + $0x178] sm:$0xff] }
  0xa5   : > { %2140 = vmatpush1.bf16.msra.mxu0 %v2139_v32  ;;  %v2176_v10 = vpack.c.bf16 %v551_v6, %v548_v5  ;;  %v554_v11 = vld [vmem:[%s3228_s1 + $0x160] sm:$0xff]  ;;  %v741_v15 = vld [vmem:[#allocation5 + $0x20] sm:$0xff]  ;;  %v740_v18 = vld [vmem:[#allocation5 + $0x18] sm:$0xff] }
  0xa6   : > { %2142 = vmatprep.subr.bf16.mxu0 %v2141_v34  ;;  %2165 = vmatpush3.bf16.msra.mxu1 %v2164_v47  ;;  %v2179_v13 = vpack.c.bf16 %v557_v12, %v554_v11  ;;  %v738_v14 = vld [vmem:[#allocation5 + $0x8] sm:$0xff]  ;;  %v737_v17 = vld [vmem:[#allocation5] sm:$0xff]  ;;  %v739_v20 = vld [vmem:[#allocation5 + $0x10] sm:$0xff] }
  0xa7   : > { %2166 = vmatprep.subr.bf16.mxu1 %v2714_v8  ;;  %v2181_v16 = vpack.c.bf16 %v741_v15, %v738_v14  ;;  %v2183_v19 = vpack.c.bf16 %v740_v18, %v737_v17  ;;  %v742_v21 = vld [vmem:[#allocation5 + $0x28] sm:$0xff]  ;;  %v744_v23 = vld [vmem:[#allocation5 + $0x38] sm:$0xff]  ;;  %v747_v24 = vld [vmem:[#allocation5 + $0x50] sm:$0xff] }
  0xa8   : > { %v2214_v22 = vpack.c.bf16 %v742_v21, %v739_v20  ;;  %v2185_v25 = vpack.c.bf16 %v747_v24, %v744_v23  ;;  %v743_v26 = vld [vmem:[#allocation5 + $0x30] sm:$0xff]  ;;  %v746_v27 = vld [vmem:[#allocation5 + $0x48] sm:$0xff]  ;;  %v745_v28 = vld [vmem:[#allocation5 + $0x40] sm:$0xff] }
  0xa9   : > { %2144 = vmatpush1.bf16.msra.mxu0 %v2143_v42  ;;  %v2187_v29 = vpack.c.bf16 %v746_v27, %v743_v26  ;;  %v748_v30 = vld [vmem:[#allocation5 + $0x58] sm:$0xff]  ;;  %v750_v32 = vld [vmem:[#allocation5 + $0x68] sm:$0xff]  ;;  %v753_v33 = vld [vmem:[#allocation5 + $0x80] sm:$0xff] }
  0xaa   : > { %2146 = vmatprep.subr.bf16.mxu0 %v2145_v43  ;;  %2168 = vmatpush3.bf16.msra.mxu1 %v2167_v56  ;;  %v2217_v31 = vpack.c.bf16 %v748_v30, %v745_v28  ;;  %v2189_v34 = vpack.c.bf16 %v753_v33, %v750_v32  ;;  %v749_v35 = vld [vmem:[#allocation5 + $0x60] sm:$0xff]  ;;  %v752_v36 = vld [vmem:[#allocation5 + $0x78] sm:$0xff]  ;;  %v751_v38 = vld [vmem:[#allocation5 + $0x70] sm:$0xff]  ;;  %v560_v28 = vlaneseq }
  0xab   : > { %2169 = vmatprep.subr.bf16.mxu1 %v2714_v8  ;;  %v2191_v37 = vpack.c.bf16 %v752_v36, %v749_v35  ;;  %v754_v39 = vld [vmem:[#allocation5 + $0x88] sm:$0xff]  ;;  %v756_v41 = vld [vmem:[#allocation5 + $0x98] sm:$0xff]  ;;  %v759_v42 = vld [vmem:[#allocation5 + $0xb0] sm:$0xff] }
  0xac   : > { %v2220_v40 = vpack.c.bf16 %v754_v39, %v751_v38  ;;  %v2193_v43 = vpack.c.bf16 %v759_v42, %v756_v41  ;;  %v755_v44 = vld [vmem:[#allocation5 + $0x90] sm:$0xff]  ;;  %v758_v45 = vld [vmem:[#allocation5 + $0xa8] sm:$0xff]  ;;  %v757_v47 = vld [vmem:[#allocation5 + $0xa0] sm:$0xff] }
  0xad   : > { %2148 = vmatpush1.bf16.msra.mxu0 %v2147_v51  ;;  %v2195_v46 = vpack.c.bf16 %v758_v45, %v755_v44  ;;  %v760_v48 = vld [vmem:[#allocation5 + $0xb8] sm:$0xff]  ;;  %v762_v50 = vld [vmem:[#allocation5 + $0xc8] sm:$0xff]  ;;  %v765_v51 = vld [vmem:[#allocation5 + $0xe0] sm:$0xff] }
  0xae   : > { %2150 = vmatprep.subr.bf16.mxu0 %v2149_v52  ;;  %2171 = vmatpush3.bf16.msra.mxu1 %v2170_v0  ;;  %v2223_v49 = vpack.c.bf16 %v760_v48, %v757_v47  ;;  %v2197_v52 = vpack.c.bf16 %v765_v51, %v762_v50  ;;  %v761_v53 = vld [vmem:[#allocation5 + $0xc0] sm:$0xff]  ;;  %v764_v54 = vld [vmem:[#allocation5 + $0xd8] sm:$0xff]  ;;  %v763_v56 = vld [vmem:[#allocation5 + $0xd0] sm:$0xff] }
  0xaf   : > { %2172 = vmatprep.subr.bf16.mxu1 %v2714_v8  ;;  %v2199_v55 = vpack.c.bf16 %v764_v54, %v761_v53  ;;  %v766_v57 = vld [vmem:[#allocation5 + $0xe8] sm:$0xff]  ;;  %v768_v59 = vld [vmem:[#allocation5 + $0xf8] sm:$0xff]  ;;  %v769_v0 = vld [vmem:[#allocation5 + $0x100] sm:$0xff] }
  0xb0   : > { %v2226_v58 = vpack.c.bf16 %v766_v57, %v763_v56  ;;  %v770_v63 = vld [vmem:[#allocation5 + $0x108] sm:$0xff]  ;;  %v772_v1 = vld [vmem:[#allocation5 + $0x118] sm:$0xff]  ;;  %v777_v5 = vld [vmem:[#allocation5 + $0x140] sm:$0xff] }
  0xb1   : > { %2152 = vmatpush1.bf16.msra.mxu0 %v2151_v60  ;;  %v771_v60 = vld [vmem:[#allocation5 + $0x110] sm:$0xff]  ;;  %v773_v6 = vld [vmem:[#allocation5 + $0x120] sm:$0xff]  ;;  %v776_v11 = vld [vmem:[#allocation5 + $0x138] sm:$0xff] }
  0xb2   : > { %2154 = vmatprep.subr.bf16.mxu0 %v2153_v61  ;;  %2174 = vmatpush3.bf16.msra.mxu1 %v2173_v4  ;;  %v767_v61 = vld [vmem:[#allocation5 + $0xf0] sm:$0xff]  ;;  %v2201_v62 = vpack.c.bf16 %v771_v60, %v768_v59  ;;  %v774_v4 = vld [vmem:[#allocation5 + $0x128] sm:$0xff]  ;;  %v780_v14 = vld [vmem:[#allocation5 + $0x158] sm:$0xff] }
  0xb3   : > { %2175 = vmatprep.subr.bf16.mxu1 %v2714_v8  ;;  %v2203_v2 = vpack.c.bf16 %v770_v63, %v767_v61  ;;  %v775_v12 = vld [vmem:[#allocation5 + $0x130] sm:$0xff]  ;;  %v782_v20 = vld [vmem:[#allocation5 + $0x168] sm:$0xff]  ;;  %v781_v21 = vld [vmem:[#allocation5 + $0x160] sm:$0xff] }
  0xb4   : > { %v783_v15 = vld [vmem:[#allocation5 + $0x170] sm:$0xff]  ;;  %v945_v23 = vld [vmem:[#allocation7 + $0x8] sm:$0xff]  ;;  %v948_v24 = vld [vmem:[#allocation7 + $0x20] sm:$0xff] }
  0xb5   : > { %2156 = vmatpush1.bf16.msra.mxu0 %v2155_v3  ;;  %v2229_v3 = vpack.c.bf16 %v772_v1, %v769_v0  ;;  %v2209_v18 = vpack.c.bf16 %v783_v15, %v780_v14  ;;  %v2237_v27 = vpack.c.bf16 %v948_v24, %v945_v23  ;;  %v507_v42 = vld [vmem:[%s2965_s29 + $0x8] sm:$0xff]  ;;  %v508_v54 = vld [vmem:[%s2965_s29 + $0x10] sm:$0xff]  ;;  %v944_v59 = vld [vmem:[#allocation7] sm:$0xff] }
  0xb6   : > { %2177 = vmatpush3.bf16.msra.mxu1 %v2176_v10  ;;  %2182 = vmatprep.subr.bf16.mxu0 %v2181_v16  ;;  %v2205_v10 = vpack.c.bf16 %v777_v5, %v774_v4  ;;  %v2207_v16 = vpack.c.bf16 %v776_v11, %v773_v6  ;;  %v947_v61 = vld [vmem:[#allocation7 + $0x18] sm:$0xff]  ;;  %v949_v63 = vld [vmem:[#allocation7 + $0x28] sm:$0xff]  ;;  %v950_v5 = vld [vmem:[#allocation7 + $0x30] sm:$0xff] }
  0xb7   : > { %2178 = vmatprep.subr.bf16.mxu1 %v2714_v8  ;;  %v951_v1 = vld [vmem:[#allocation7 + $0x38] sm:$0xff]  ;;  %v2239_v4 = vpack.c.bf16 %v947_v61, %v944_v59  ;;  %v957_v15 = vld [vmem:[#allocation7 + $0x68] sm:$0xff]  ;;  %v966_v24 = vld [vmem:[#allocation7 + $0xb0] sm:$0xff] }
  0xb8   : > { %640 = vmatmul.mubr.f32.vlgmr.msra.gmra.mrb[0].mxu0 %v3116_v7  ;;  %v955_v14 = vld [vmem:[#allocation7 + $0x58] sm:$0xff]  ;;  %v985_v61 = vld [vmem:[#allocation7 + $0x148] sm:$0xff] }
  0xb9   : > { %866 = vmatprep.mubr.f32.mxu0 %v2715_v9  ;;  %2184 = vmatpush1.bf16.msra.mxu0 %v2183_v19  ;;  %v779_v19 = vld [vmem:[#allocation5 + $0x150] sm:$0xff]  ;;  %v963_v23 = vld [vmem:[#allocation7 + $0x98] sm:$0xff] }
  0xba   : > { %2180 = vmatpush3.bf16.msra.mxu1 %v2179_v13  ;;  %2186 = vmatprep.subr.bf16.mxu0 %v2185_v25  ;;  %v778_v13 = vld [vmem:[#allocation5 + $0x148] sm:$0xff]  ;;  %v2211_v25 = vpack.c.bf16 %v782_v20, %v779_v19  ;;  %v959_v20 = vld [vmem:[#allocation7 + $0x78] sm:$0xff] }
  0xbb   : > { %2213 = vmatprep.subr.bf16.mxu1 %v2714_v8  ;;  %v2232_v17 = vpack.c.bf16 %v778_v13, %v775_v12  ;;  %v953_v12 = vld [vmem:[#allocation7 + $0x48] sm:$0xff]  ;;  %v952_v13 = vld [vmem:[#allocation7 + $0x40] sm:$0xff]  ;;  %v983_v59 = vld [vmem:[#allocation7 + $0x138] sm:$0xff] }
  0xbd   : > { %1948 = vmatmul.mubr.f32.vlgmr.msra.gmra.mrb[0].mxu1 %v3116_v7  ;;  %2188 = vmatpush1.bf16.msra.mxu0 %v2187_v29  ;;  %v561_v29 = vshrl.u32 %v560_v28, 7  ;;  %v2249_v28 = vpack.c.bf16 %v966_v24, %v963_v23  ;;  %v1177_v24 = vld [vmem:[#allocation9 + $0x30] sm:$0xff] }
  0xbe   : > { %1982 = vmatprep.mubr.msk.f32.mxu1 %vm2716_vm0, %v2715_v9  ;;  %2215 = vmatpush3.bf16.msra.mxu1 %v2214_v22  ;;  %v784_v22 = vld [vmem:[#allocation5 + $0x178] sm:$0xff] }
  0xbf   : > { %2216 = vmatprep.subr.bf16.mxu1 %v2714_v8  ;;  %2190 = vmatprep.subr.bf16.mxu0 %v2189_v34  ;;  %v2235_v26 = vpack.c.bf16 %v784_v22, %v781_v21  ;;  %v3140_v30 = vsub.s32 0, %v561_v29  ;;  %v3146_v33 = vsub.s32 1, %v561_v29  ;;  %v506_v34 = vld [vmem:[%s2965_s29] sm:$0xff]  ;;  %v958_v21 = vld [vmem:[#allocation7 + $0x70] sm:$0xff] }
  0xc0   : > { %v961_v22 = vld [vmem:[#allocation7 + $0x88] sm:$0xff] }
  0xc1   : > { %2192 = vmatpush1.bf16.msra.mxu0 %v2191_v37 }
  0xc2   : > { %2218 = vmatpush3.bf16.msra.mxu1 %v2217_v31  ;;  %2194 = vmatprep.subr.bf16.mxu0 %v2193_v43  ;;  %v558_v31 = vld [vmem:[%s3233_s6] sm:$0x7] }
  0xc3   : > { %2219 = vmatprep.subr.bf16.mxu1 %v2714_v8  ;;  %v563_v32 = vrot.slane %v558_v31, %v3140_v30  ;;  %v567_v39 = vrot.slane %v558_v31, %v3146_v33 }
  0xc5   : > { %2196 = vmatpush1.bf16.msra.mxu0 %v2195_v46 }
  0xc6   : > { %2221 = vmatpush3.bf16.msra.mxu1 %v2220_v40  ;;  %2198 = vmatprep.subr.bf16.mxu0 %v2197_v52 }
  0xc7   : > { %2222 = vmatprep.subr.bf16.mxu1 %v2714_v8 }
  0xc9   : > { %2200 = vmatpush1.bf16.msra.mxu0 %v2199_v55 }
  0xca   : > { %2224 = vmatpush3.bf16.msra.mxu1 %v2223_v49  ;;  %2202 = vmatprep.subr.bf16.mxu0 %v2201_v62  ;;  %v3151_v49 = vsub.s32 2, %v561_v29  ;;  %v946_v62 = vld [vmem:[#allocation7 + $0x10] sm:$0xff]  ;;  %v965_v29 = vld [vmem:[#allocation7 + $0xa8] sm:$0xff] }
  0xcb   : > { %2225 = vmatprep.subr.bf16.mxu1 %v2714_v8  ;;  %v2270_v6 = vpack.c.bf16 %v949_v63, %v946_v62  ;;  %v987_v62 = vld [vmem:[#allocation7 + $0x158] sm:$0xff]  ;;  %v990_v63 = vld [vmem:[#allocation7 + $0x170] sm:$0xff] }
  0xcc   : > { %v571_v50 = vrot.slane %v558_v31, %v3151_v49  ;;  %v964_v31 = vld [vmem:[#allocation7 + $0xa0] sm:$0xff] }
  0xcd   : > { %2204 = vmatpush1.bf16.msra.mxu0 %v2203_v2  ;;  %v954_v2 = vld [vmem:[#allocation7 + $0x50] sm:$0xff] }
  0xce   : > { %2227 = vmatpush3.bf16.msra.mxu1 %v2226_v58  ;;  %2206 = vmatprep.subr.bf16.mxu0 %v2205_v10  ;;  %v2241_v11 = vpack.c.bf16 %v954_v2, %v951_v1  ;;  %v986_v1 = vld [vmem:[#allocation7 + $0x150] sm:$0xff] }
  0xcf   : > { %2228 = vmatprep.subr.bf16.mxu1 %v2714_v8 }
  0xd1   : > { %2208 = vmatpush1.bf16.msra.mxu0 %v2207_v16  ;;  %v960_v16 = vld [vmem:[#allocation7 + $0x80] sm:$0xff] }
  0xd2   : > { %2230 = vmatpush3.bf16.msra.mxu1 %v2229_v3  ;;  %2210 = vmatprep.subr.bf16.mxu0 %v2209_v18  ;;  %v2273_v18 = vpack.c.bf16 %v955_v14, %v952_v13  ;;  %v2245_v19 = vpack.c.bf16 %v960_v16, %v957_v15  ;;  %v1172_v13 = vld [vmem:[#allocation9 + $0x8] sm:$0xff]  ;;  %v1175_v14 = vld [vmem:[#allocation9 + $0x20] sm:$0xff] }
  0xd3   : > { %2231 = vmatprep.subr.bf16.mxu1 %v2714_v8  ;;  %v2293_v15 = vpack.c.bf16 %v1175_v14, %v1172_v13  ;;  %v1171_v16 = vld [vmem:[#allocation9] sm:$0xff]  ;;  %v1210_v13 = vld [vmem:[#allocation9 + $0x138] sm:$0xff]  ;;  %v1209_v14 = vld [vmem:[#allocation9 + $0x130] sm:$0xff] }
  0xd5   : > { %2212 = vmatpush1.bf16.msra.mxu0 %v2211_v25 }
  0xd6   : > { %2233 = vmatpush3.bf16.msra.mxu1 %v2232_v17  ;;  %2238 = vmatprep.subr.bf16.mxu0 %v2237_v27  ;;  %v956_v17 = vld [vmem:[#allocation7 + $0x60] sm:$0xff]  ;;  %v2276_v27 = vpack.c.bf16 %v961_v22, %v958_v21  ;;  %v1178_v21 = vld [vmem:[#allocation9 + $0x38] sm:$0xff]  ;;  %v1181_v22 = vld [vmem:[#allocation9 + $0x50] sm:$0xff] }
  0xd7   : > { %2234 = vmatprep.subr.bf16.mxu1 %v2714_v8  ;;  %v2247_v25 = vpack.c.bf16 %v959_v20, %v956_v17  ;;  %v2297_v23 = vpack.c.bf16 %v1181_v22, %v1178_v21  ;;  %v1216_v21 = vld [vmem:[#allocation9 + $0x168] sm:$0xff]  ;;  %v1215_v22 = vld [vmem:[#allocation9 + $0x160] sm:$0xff] }
  0xda   : > { %2236 = vmatpush3.bf16.msra.mxu1 %v2235_v26  ;;  %v962_v26 = vld [vmem:[#allocation7 + $0x90] sm:$0xff] }
  0xdb   : > { %2269 = vmatprep.subr.bf16.mxu1 %v2714_v8 }
 0x18b   : > { %v641_v35 = vpop.f32.mrb[0].mxu0 }
 0x18c   : > { %v642_v36 = vadd.f32 %v641_v35, %v563_v32  ;;  %v643_v37 = vpop.f32.mrb[1].mxu0  ;;  %v967_v32 = vld [vmem:[#allocation7 + $0xb8] sm:$0xff]  ;;  %v972_v35 = vld [vmem:[#allocation7 + $0xe0] sm:$0xff] }
 0x18d   : > { %v644_v41 = vadd.f32 %v643_v37, %v567_v39  ;;  %v968_v37 = vld [vmem:[#allocation7 + $0xc0] sm:$0xff] }
 0x18e   : > { %v716_v38 = vadd.f32 %v642_v36, %v506_v34  ;;  %v969_v34 = vld [vmem:[#allocation7 + $0xc8] sm:$0xff]  ;;  %v2251_v36 = vpack.c.bf16 %v965_v29, %v962_v26  ;;  %v1179_v26 = vld [vmem:[#allocation9 + $0x40] sm:$0xff] }
 0x18f   : > { %v717_v45 = vadd.f32 %v644_v41, %v507_v42  ;;  %v2253_v39 = vpack.c.bf16 %v972_v35, %v969_v34  ;;  %v970_v41 = vld [vmem:[#allocation7 + $0xd0] sm:$0xff]  ;;  %v973_v42 = vld [vmem:[#allocation7 + $0xe8] sm:$0xff]  ;;  %v1183_v35 = vld [vmem:[#allocation9 + $0x60] sm:$0xff] }
 0x190   : > { %v1803_v40 = vmul.f32 -1.442695, %v716_v38  ;;  %v712_v43 = vpop.f32.mrb[0].mxu1  ;;  %v2279_v38 = vpack.c.bf16 %v967_v32, %v964_v31  ;;  %v1184_v31 = vld [vmem:[#allocation9 + $0x68] sm:$0xff]  ;;  %v1187_v32 = vld [vmem:[#allocation9 + $0x80] sm:$0xff] }
 0x191   : > { %v1949_v44 = vpop.f32.mrb[1].mxu1  ;;  %v1804_v46 = vmul.f32 -1.442695, %v717_v45  ;;  %v713_v51 = vadd.f32 %v712_v43, %v571_v50  ;;  %v975_v43 = vld [vmem:[#allocation7 + $0xf8] sm:$0xff]  ;;  %v977_v50 = vld [vmem:[#allocation7 + $0x108] sm:$0xff]  ;;  %v2301_v34 = vpack.c.bf16 %v1187_v32, %v1184_v31 }
 0x192   : > { %2512 = vpow2.f32 %v1803_v40  ;;  %v971_v40 = vld [vmem:[#allocation7 + $0xd8] sm:$0xff]  ;;  %v978_v44 = vld [vmem:[#allocation7 + $0x110] sm:$0xff]  ;;  %v992_v32 = vld [vmem:[%s3235_s8] sm:$0x7] }
 0x193   : > { %2514 = vpow2.f32 %v1804_v46  ;;  %v2255_v45 = vpack.c.bf16 %v971_v40, %v968_v37  ;;  %v974_v46 = vld [vmem:[#allocation7 + $0xf0] sm:$0xff] }
 0x19c   : > { %v2513_v47 = vpop.eup %2512 }
 0x19d   : > { %v724_v48 = vadd.f32 1.0, %v2513_v47  ;;  %v2515_v52 = vpop.eup %2514  ;;  %v2282_v47 = vpack.c.bf16 %v973_v42, %v970_v41  ;;  %v1190_v41 = vld [vmem:[#allocation9 + $0x98] sm:$0xff]  ;;  %v1193_v42 = vld [vmem:[#allocation9 + $0xb0] sm:$0xff] }
 0x19e   : > { %v725_v56 = vadd.f32 1.0, %v2515_v52  ;;  %v979_v52 = vld [vmem:[#allocation7 + $0x118] sm:$0xff] }
 0x19f   : > { %2516 = vrcp.f32 %v724_v48  ;;  %v2257_v48 = vpack.c.bf16 %v978_v44, %v975_v43  ;;  %v2305_v43 = vpack.c.bf16 %v1193_v42, %v1190_v41  ;;  %v1189_v44 = vld [vmem:[#allocation9 + $0x90] sm:$0xff]  ;;  %v1001_v42 = vrot.slane %v992_v32, %v3146_v33 }
 0x1a9   : > { %v2517_v53 = vpop.eup %2516 }
 0x1aa   : > { %v730_v55 = vmul.f32 %v2517_v53, %v713_v51  ;;  %v976_v51 = vld [vmem:[#allocation7 + $0x100] sm:$0xff]  ;;  %v981_v53 = vld [vmem:[#allocation7 + $0x128] sm:$0xff] }
 0x1ac   : > { %v731_v57 = vadd.f32 %v730_v55, %v508_v54  ;;  %v984_v54 = vld [vmem:[#allocation7 + $0x140] sm:$0xff]  ;;  %v2259_v55 = vpack.c.bf16 %v977_v50, %v974_v46 }
 0x1ae   : > { %2518 = vtanh.f32 %v731_v57  ;;  %v2285_v57 = vpack.c.bf16 %v979_v52, %v976_v51  ;;  %v1196_v51 = vld [vmem:[#allocation9 + $0xc8] sm:$0xff]  ;;  %v1199_v52 = vld [vmem:[#allocation9 + $0xe0] sm:$0xff] }
 0x1af   : > { %2520 = vrcp.f32 %v725_v56  ;;  %v980_v56 = vld [vmem:[#allocation7 + $0x120] sm:$0xff] }
 0x1b8   : > { %v2519_v58 = vpop.eup %2518 }
 0x1b9   : > { %v733_v60 = vsub.f32 %v3116_v7, %v2519_v58  ;;  %v2521_v0 = vpop.eup %2520  ;;  %v2243_v7 = vpack.c.bf16 %v953_v12, %v950_v5  ;;  %v988_v5 = vld [vmem:[#allocation7 + $0x160] sm:$0xff]  ;;  %v3166_v12 = vld [vmem:[#allocation3] sm:$0xff] }
 0x1bb   : > { %v734_v3 = vmul.f32 %v2521_v0, %v733_v60  ;;  %v982_v60 = vld [vmem:[#allocation7 + $0x130] sm:$0xff]  ;;  %v2263_v0 = vpack.c.bf16 %v983_v59, %v980_v56 }
 0x1bc   : > { %v2288_v2 = vpack.c.bf16 %v985_v61, %v982_v60  ;;  %v1202_v60 = vld [vmem:[#allocation9 + $0xf8] sm:$0xff]  ;;  %v1205_v61 = vld [vmem:[#allocation9 + $0x110] sm:$0xff] }
 0x1bd   : > { %v735_v10 = vadd.f32 %v2519_v58, %v734_v3  ;;  %v2261_v58 = vpack.c.bf16 %v984_v54, %v981_v53  ;;  %v2265_v3 = vpack.c.bf16 %v990_v63, %v987_v62  ;;  %v2309_v53 = vpack.c.bf16 %v1199_v52, %v1196_v51  ;;  %v1195_v54 = vld [vmem:[#allocation9 + $0xc0] sm:$0xff]  ;;  %v1201_v62 = vld [vmem:[#allocation9 + $0xf0] sm:$0xff] }
 0x1be   : > { %v2313_v63 = vpack.c.bf16 %v1205_v61, %v1202_v60  ;;  %v1005_v52 = vrot.slane %v992_v32, %v3151_v49 }
 0x1bf   : > { %736 = vst [vmem:[#allocation2] sm:$0xff] %v735_v10  ;;  %867 = vmatmul.mubr.f32.vlgmr.msra.gmra.mrb[2].mxu0 %v735_v10  ;;  %1983 = vmatmul.mubr.f32.vlgmr.msra.gmra.mrb[2].mxu1 %v735_v10 }
 0x1c0   : > { %2240 = vmatpush1.bf16.msra.mxu0 %v2239_v4  ;;  %2271 = vmatpush3.bf16.msra.mxu1 %v2270_v6  ;;  %v989_v4 = vld [vmem:[#allocation7 + $0x168] sm:$0xff]  ;;  %v991_v6 = vld [vmem:[#allocation7 + $0x178] sm:$0xff] }
 0x1c1   : > { %2242 = vmatprep.subr.bf16.mxu0 %v2241_v11  ;;  %2272 = vmatprep.subr.bf16.mxu1 %v2714_v8  ;;  %v2267_v10 = vpack.c.bf16 %v989_v4, %v986_v1  ;;  %v2291_v11 = vpack.c.bf16 %v991_v6, %v988_v5  ;;  %v1203_v1 = vld [vmem:[#allocation9 + $0x100] sm:$0xff]  ;;  %v1208_v5 = vld [vmem:[#allocation9 + $0x128] sm:$0xff] }
 0x1c2   : > { %1073 = vmatprep.mubr.f32.mxu0 %v2715_v9  ;;  %2017 = vmatprep.mubr.msk.f32.mxu1 %vm2716_vm0, %v2715_v9  ;;  %v1211_v6 = vld [vmem:[#allocation9 + $0x140] sm:$0xff] }
 0x1c4   : > { %2244 = vmatpush1.bf16.msra.mxu0 %v2243_v7  ;;  %2274 = vmatpush3.bf16.msra.mxu1 %v2273_v18  ;;  %v1174_v7 = vld [vmem:[#allocation9 + $0x18] sm:$0xff]  ;;  %v1173_v18 = vld [vmem:[#allocation9 + $0x10] sm:$0xff] }
 0x1c5   : > { %2246 = vmatprep.subr.bf16.mxu0 %v2245_v19  ;;  %2275 = vmatprep.subr.bf16.mxu1 %v2714_v8  ;;  %v2295_v17 = vpack.c.bf16 %v1174_v7, %v1171_v16  ;;  %v1176_v19 = vld [vmem:[#allocation9 + $0x28] sm:$0xff]  ;;  %v1214_v16 = vld [vmem:[#allocation9 + $0x158] sm:$0xff]  ;;  %v1217_v7 = vld [vmem:[#allocation9 + $0x170] sm:$0xff] }
 0x1c6   : > { %v2326_v20 = vpack.c.bf16 %v1176_v19, %v1173_v18  ;;  %v2321_v19 = vpack.c.bf16 %v1217_v7, %v1214_v16  ;;  %v1387_v16 = vld [vmem:[#allocation10 + $0x48] sm:$0xff]  ;;  %v1386_v7 = vld [vmem:[#allocation10 + $0x40] sm:$0xff] }
 0x1c8   : > { %2248 = vmatpush1.bf16.msra.mxu0 %v2247_v25  ;;  %2277 = vmatpush3.bf16.msra.mxu1 %v2276_v27  ;;  %v1180_v25 = vld [vmem:[#allocation9 + $0x48] sm:$0xff] }
 0x1c9   : > { %2250 = vmatprep.subr.bf16.mxu0 %v2249_v28  ;;  %2278 = vmatprep.subr.bf16.mxu1 %v2714_v8  ;;  %v2299_v27 = vpack.c.bf16 %v1180_v25, %v1177_v24  ;;  %v1182_v28 = vld [vmem:[#allocation9 + $0x58] sm:$0xff]  ;;  %v1379_v24 = vld [vmem:[#allocation10 + $0x8] sm:$0xff]  ;;  %v1382_v25 = vld [vmem:[#allocation10 + $0x20] sm:$0xff] }
 0x1ca   : > { %v2329_v29 = vpack.c.bf16 %v1182_v28, %v1179_v26  ;;  %v2349_v28 = vpack.c.bf16 %v1382_v25, %v1379_v24  ;;  %v1392_v24 = vld [vmem:[#allocation10 + $0x70] sm:$0xff]  ;;  %v1395_v25 = vld [vmem:[#allocation10 + $0x88] sm:$0xff] }
 0x1cc   : > { %2252 = vmatpush1.bf16.msra.mxu0 %v2251_v36  ;;  %2280 = vmatpush3.bf16.msra.mxu1 %v2279_v38  ;;  %v1186_v36 = vld [vmem:[#allocation9 + $0x78] sm:$0xff]  ;;  %v1185_v38 = vld [vmem:[#allocation9 + $0x70] sm:$0xff] }
 0x1cd   : > { %2254 = vmatprep.subr.bf16.mxu0 %v2253_v39  ;;  %2281 = vmatprep.subr.bf16.mxu1 %v2714_v8  ;;  %v2303_v37 = vpack.c.bf16 %v1186_v36, %v1183_v35  ;;  %v1188_v39 = vld [vmem:[#allocation9 + $0x88] sm:$0xff]  ;;  %v997_v36 = vrot.slane %v992_v32, %v3140_v30 }
 0x1ce   : > { %v2332_v40 = vpack.c.bf16 %v1188_v39, %v1185_v38 }
 0x1d0   : > { %2256 = vmatpush1.bf16.msra.mxu0 %v2255_v45  ;;  %2283 = vmatpush3.bf16.msra.mxu1 %v2282_v47  ;;  %v1192_v45 = vld [vmem:[#allocation9 + $0xa8] sm:$0xff]  ;;  %v1191_v47 = vld [vmem:[#allocation9 + $0xa0] sm:$0xff] }
 0x1d1   : > { %2258 = vmatprep.subr.bf16.mxu0 %v2257_v48  ;;  %2284 = vmatprep.subr.bf16.mxu1 %v2714_v8  ;;  %v2307_v46 = vpack.c.bf16 %v1192_v45, %v1189_v44  ;;  %v1194_v48 = vld [vmem:[#allocation9 + $0xb8] sm:$0xff] }
 0x1d2   : > { %v2335_v50 = vpack.c.bf16 %v1194_v48, %v1191_v47 }
 0x1d4   : > { %2260 = vmatpush1.bf16.msra.mxu0 %v2259_v55  ;;  %2286 = vmatpush3.bf16.msra.mxu1 %v2285_v57  ;;  %v1198_v55 = vld [vmem:[#allocation9 + $0xd8] sm:$0xff]  ;;  %v1197_v57 = vld [vmem:[#allocation9 + $0xd0] sm:$0xff] }
 0x1d5   : > { %2262 = vmatprep.subr.bf16.mxu0 %v2261_v58  ;;  %2287 = vmatprep.subr.bf16.mxu1 %v2714_v8  ;;  %v2311_v56 = vpack.c.bf16 %v1198_v55, %v1195_v54  ;;  %v1200_v58 = vld [vmem:[#allocation9 + $0xe8] sm:$0xff] }
 0x1d6   : > { %v2338_v59 = vpack.c.bf16 %v1200_v58, %v1197_v57 }
 0x1d8   : > { %2264 = vmatpush1.bf16.msra.mxu0 %v2263_v0  ;;  %2289 = vmatpush3.bf16.msra.mxu1 %v2288_v2  ;;  %v1204_v0 = vld [vmem:[#allocation9 + $0x108] sm:$0xff]  ;;  %v1206_v2 = vld [vmem:[#allocation9 + $0x118] sm:$0xff] }
 0x1d9   : > { %2266 = vmatprep.subr.bf16.mxu0 %v2265_v3  ;;  %2290 = vmatprep.subr.bf16.mxu1 %v2714_v8  ;;  %v2315_v3 = vpack.c.bf16 %v1204_v0, %v1201_v62  ;;  %v2341_v4 = vpack.c.bf16 %v1206_v2, %v1203_v1  ;;  %v1378_v62 = vld [vmem:[#allocation10] sm:$0xff]  ;;  %v1381_v0 = vld [vmem:[#allocation10 + $0x18] sm:$0xff]  ;;  %v1380_v1 = vld [vmem:[#allocation10 + $0x10] sm:$0xff] }
 0x1da   : > { %v1383_v2 = vld [vmem:[#allocation10 + $0x28] sm:$0xff] }
 0x1dc   : > { %2268 = vmatpush1.bf16.msra.mxu0 %v2267_v10  ;;  %2292 = vmatpush3.bf16.msra.mxu1 %v2291_v11  ;;  %v1207_v10 = vld [vmem:[#allocation9 + $0x120] sm:$0xff]  ;;  %v2317_v11 = vpack.c.bf16 %v1211_v6, %v1208_v5  ;;  %v1388_v5 = vld [vmem:[#allocation10 + $0x50] sm:$0xff] }
 0x1dd   : > { %2325 = vmatprep.subr.bf16.mxu1 %v2714_v8  ;;  %2294 = vmatprep.subr.bf16.mxu0 %v2293_v15  ;;  %v1212_v15 = vld [vmem:[#allocation9 + $0x148] sm:$0xff] }
 0x1de   : > { %v2344_v18 = vpack.c.bf16 %v1212_v15, %v1209_v14 }
 0x1df   : > { %1074 = vmatmul.mubr.f32.vlgmr.msra.gmra.mrb[2].mxu0 %v3166_v12  ;;  %2018 = vmatmul.mubr.f32.vlgmr.msra.gmra.mrb[4].mxu1 %v3166_v12 }
 0x1e0   : > { %1300 = vmatprep.mubr.f32.mxu0 %v2715_v9  ;;  %2052 = vmatprep.mubr.msk.f32.mxu1 %vm2716_vm0, %v2715_v9 }
 0x1e1   : > { %2296 = vmatpush1.bf16.msra.mxu0 %v2295_v17  ;;  %2327 = vmatpush3.bf16.msra.mxu1 %v2326_v20  ;;  %v2319_v17 = vpack.c.bf16 %v1210_v13, %v1207_v10  ;;  %v1213_v20 = vld [vmem:[#allocation9 + $0x150] sm:$0xff]  ;;  %v2351_v10 = vpack.c.bf16 %v1381_v0, %v1378_v62  ;;  %v2382_v13 = vpack.c.bf16 %v1383_v2, %v1380_v1  ;;  %v1421_v0 = vld [vmem:[#allocation10 + $0x158] sm:$0xff] }
 0x1e2   : > { %2328 = vmatprep.subr.bf16.mxu1 %v2714_v8  ;;  %2298 = vmatprep.subr.bf16.mxu0 %v2297_v23  ;;  %v1218_v23 = vld [vmem:[#allocation9 + $0x178] sm:$0xff]  ;;  %v2323_v26 = vpack.c.bf16 %v1216_v21, %v1213_v20  ;;  %v1390_v20 = vld [vmem:[#allocation10 + $0x60] sm:$0xff]  ;;  %v1416_v62 = vld [vmem:[#allocation10 + $0x130] sm:$0xff] }
 0x1e3   : > { %v1424_v1 = vld [vmem:[#allocation10 + $0x170] sm:$0xff] }
 0x1e5   : > { %2300 = vmatpush1.bf16.msra.mxu0 %v2299_v27  ;;  %2330 = vmatpush3.bf16.msra.mxu1 %v2329_v29  ;;  %v2347_v27 = vpack.c.bf16 %v1218_v23, %v1215_v22  ;;  %v1393_v23 = vld [vmem:[#allocation10 + $0x78] sm:$0xff] }
 0x1e6   : > { %2331 = vmatprep.subr.bf16.mxu1 %v2714_v8  ;;  %2302 = vmatprep.subr.bf16.mxu0 %v2301_v34  ;;  %v785_v34 = vld [vmem:[%s3234_s7] sm:$0x7] }
 0x1e7   : > { %v790_v35 = vrot.slane %v785_v34, %v3140_v30  ;;  %v794_v41 = vrot.slane %v785_v34, %v3146_v33 }
 0x1e9   : > { %2304 = vmatpush1.bf16.msra.mxu0 %v2303_v37  ;;  %2333 = vmatpush3.bf16.msra.mxu1 %v2332_v40  ;;  %v2429_v37 = vadd.f32 %v997_v36, %v790_v35  ;;  %v1398_v35 = vld [vmem:[#allocation10 + $0xa0] sm:$0xff]  ;;  %v1401_v36 = vld [vmem:[#allocation10 + $0xb8] sm:$0xff] }
 0x1ea   : > { %2334 = vmatprep.subr.bf16.mxu1 %v2714_v8  ;;  %2306 = vmatprep.subr.bf16.mxu0 %v2305_v43 }
 0x1ed   : > { %2308 = vmatpush1.bf16.msra.mxu0 %v2307_v46  ;;  %2336 = vmatpush3.bf16.msra.mxu1 %v2335_v50  ;;  %v2431_v46 = vadd.f32 %v1001_v42, %v794_v41  ;;  %v2391_v41 = vpack.c.bf16 %v1401_v36, %v1398_v35  ;;  %v1405_v42 = vld [vmem:[#allocation10 + $0xd8] sm:$0xff] }
 0x1ee   : > { %2337 = vmatprep.subr.bf16.mxu1 %v2714_v8  ;;  %2310 = vmatprep.subr.bf16.mxu0 %v2309_v53  ;;  %v798_v53 = vrot.slane %v785_v34, %v3151_v49  ;;  %v1399_v34 = vld [vmem:[#allocation10 + $0xa8] sm:$0xff] }
 0x1f1   : > { %2312 = vmatpush1.bf16.msra.mxu0 %v2311_v56  ;;  %2339 = vmatpush3.bf16.msra.mxu1 %v2338_v59 }
 0x1f2   : > { %2314 = vmatprep.subr.bf16.mxu0 %v2313_v63  ;;  %2340 = vmatprep.subr.bf16.mxu1 %v2714_v8 }
 0x1f5   : > { %2316 = vmatpush1.bf16.msra.mxu0 %v2315_v3  ;;  %2342 = vmatpush3.bf16.msra.mxu1 %v2341_v4  ;;  %v1385_v4 = vld [vmem:[#allocation10 + $0x38] sm:$0xff] }
 0x1f6   : > { %2318 = vmatprep.subr.bf16.mxu0 %v2317_v11  ;;  %2343 = vmatprep.subr.bf16.mxu1 %v2714_v8  ;;  %v1384_v11 = vld [vmem:[#allocation10 + $0x30] sm:$0xff]  ;;  %v2353_v15 = vpack.c.bf16 %v1388_v5, %v1385_v4  ;;  %v2377_v5 = vpack.c.bf16 %v1424_v1, %v1421_v0  ;;  %v1620_v0 = vld [vmem:[#allocation12 + $0x58] sm:$0xff] (!%p1809_p9) }
 0x1f9   : > { %2320 = vmatpush1.bf16.msra.mxu0 %v2319_v17  ;;  %2345 = vmatpush3.bf16.msra.mxu1 %v2344_v18  ;;  %v1389_v17 = vld [vmem:[#allocation10 + $0x58] sm:$0xff]  ;;  %v1391_v18 = vld [vmem:[#allocation10 + $0x68] sm:$0xff] }
 0x1fa   : > { %2322 = vmatprep.subr.bf16.mxu0 %v2321_v19  ;;  %2346 = vmatprep.subr.bf16.mxu1 %v2714_v8  ;;  %v1394_v19 = vld [vmem:[#allocation10 + $0x80] sm:$0xff]  ;;  %v2385_v21 = vpack.c.bf16 %v1389_v17, %v1386_v7  ;;  %v1426_v17 = vld [vmem:[%s3237_s10] sm:$0x7] }
 0x1fb   : > { %v2357_v22 = vpack.c.bf16 %v1394_v19, %v1391_v18  ;;  %v1219_v18 = vld [vmem:[%s3236_s9] sm:$0x7] }
 0x1fc   : > { %v1224_v19 = vrot.slane %v1219_v18, %v3140_v30  ;;  %v1232_v35 = vrot.slane %v1219_v18, %v3151_v49 }
 0x1fd   : > { %2324 = vmatpush1.bf16.msra.mxu0 %v2323_v26  ;;  %2348 = vmatpush3.bf16.msra.mxu1 %v2347_v27  ;;  %v1397_v26 = vld [vmem:[#allocation10 + $0x98] sm:$0xff]  ;;  %v1400_v27 = vld [vmem:[#allocation10 + $0xb0] sm:$0xff] }
 0x1fe   : > { %2350 = vmatprep.subr.bf16.mxu0 %v2349_v28  ;;  %2381 = vmatprep.subr.bf16.mxu1 %v2714_v8  ;;  %v2359_v28 = vpack.c.bf16 %v1393_v23, %v1390_v20  ;;  %v2361_v32 = vpack.c.bf16 %v1400_v27, %v1397_v26  ;;  %v1228_v23 = vrot.slane %v1219_v18, %v3146_v33 }
 0x292   : > { %v939_v29 = vpop.f32.mrb[2].mxu1 }
 0x293   : > { %v1984_v31 = vpop.f32.mrb[3].mxu1  ;;  %v940_v57 = vadd.f32 %v939_v29, %v798_v53  ;;  %v1396_v29 = vld [vmem:[#allocation10 + $0x90] sm:$0xff]  ;;  %v1410_v53 = vld [vmem:[#allocation10 + $0x100] sm:$0xff] }
 0x294   : > { %v2388_v31 = vpack.c.bf16 %v1395_v25, %v1392_v24  ;;  %v1435_v24 = vrot.slane %v1426_v17, %v3146_v33 }
 0x2b2   : > { %v1075_v38 = vpop.f32.mrb[2].mxu0  ;;  %v1146_v39 = vpop.f32.mrb[4].mxu1 }
 0x2b3   : > { %v2430_v40 = vadd.f32 %v2429_v37, %v1075_v38  ;;  %v1077_v43 = vpop.f32.mrb[3].mxu0  ;;  %v2019_v44 = vpop.f32.mrb[5].mxu1  ;;  %v1147_v54 = vadd.f32 %v1146_v39, %v1005_v52  ;;  %v1403_v37 = vld [vmem:[#allocation10 + $0xc8] sm:$0xff]  ;;  %v1406_v38 = vld [vmem:[#allocation10 + $0xe0] sm:$0xff]  ;;  %v2363_v39 = vpack.c.bf16 %v1399_v34, %v1396_v29 }
 0x2b4   : > { %v2432_v47 = vadd.f32 %v2431_v46, %v1077_v43  ;;  %v1404_v43 = vld [vmem:[#allocation10 + $0xd0] sm:$0xff]  ;;  %v1407_v44 = vld [vmem:[#allocation10 + $0xe8] sm:$0xff] }
 0x2b5   : > { %v1805_v45 = vmul.f32 -1.442695, %v2430_v40  ;;  %v1402_v40 = vld [vmem:[#allocation10 + $0xc0] sm:$0xff]  ;;  %v1412_v46 = vld [vmem:[#allocation10 + $0x110] sm:$0xff]  ;;  %v1411_v52 = vld [vmem:[#allocation10 + $0x108] sm:$0xff] }
 0x2b6   : > { %v1806_v48 = vmul.f32 -1.442695, %v2432_v47  ;;  %v2367_v47 = vpack.c.bf16 %v1405_v42, %v1402_v40 }
 0x2b7   : > { %2522 = vpow2.f32 %v1805_v45  ;;  %v1409_v45 = vld [vmem:[#allocation10 + $0xf8] sm:$0xff] }
 0x2b8   : > { %2524 = vpow2.f32 %v1806_v48  ;;  %v1408_v48 = vld [vmem:[#allocation10 + $0xf0] sm:$0xff] }
 0x2c1   : > { %v2523_v50 = vpop.eup %2522 }
 0x2c2   : > { %v1158_v51 = vadd.f32 1.0, %v2523_v50  ;;  %v2525_v55 = vpop.eup %2524  ;;  %v2394_v50 = vpack.c.bf16 %v1407_v44, %v1404_v43 }
 0x2c3   : > { %v1159_v59 = vadd.f32 1.0, %v2525_v55  ;;  %v1415_v55 = vld [vmem:[#allocation10 + $0x128] sm:$0xff] }
 0x2c4   : > { %2526 = vrcp.f32 %v1158_v51  ;;  %v2369_v51 = vpack.c.bf16 %v1412_v46, %v1409_v45  ;;  %v1609_v46 = vld [vmem:[#allocation12] sm:$0xff] (!%p1809_p9) }
 0x2ce   : > { %v2527_v56 = vpop.eup %2526 }
 0x2cf   : > { %v1164_v58 = vmul.f32 %v2527_v56, %v1147_v54  ;;  %v1413_v54 = vld [vmem:[#allocation10 + $0x118] sm:$0xff]  ;;  %v1418_v56 = vld [vmem:[#allocation10 + $0x140] sm:$0xff] }
 0x2d1   : > { %v1165_v60 = vadd.f32 %v1164_v58, %v940_v57  ;;  %v2371_v57 = vpack.c.bf16 %v1411_v52, %v1408_v48  ;;  %v1414_v58 = vld [vmem:[#allocation10 + $0x120] sm:$0xff]  ;;  %v2717_v48 = vmov (!%p1809_p9), 0.0|0.0   ;;  %v2719_v52 = vmov (!%p1809_p9), 0.0  }
 0x2d3   : > { %2528 = vtanh.f32 %v1165_v60  ;;  %v2373_v60 = vpack.c.bf16 %v1418_v56, %v1415_v55  ;;  %v1614_v55 = vld [vmem:[#allocation12 + $0x28] sm:$0xff] (!%p1809_p9) }
 0x2d4   : > { %2530 = vrcp.f32 %v1159_v59  ;;  %v2397_v59 = vpack.c.bf16 %v1413_v54, %v1410_v53  ;;  %v1613_v54 = vld [vmem:[#allocation12 + $0x20] sm:$0xff] (!%p1809_p9) }
 0x2d5   : > { %v2412_v56 = vpack.c.bf16 (!%p1809_p9), %v1614_v55, %v1613_v54 }
 0x2dd   : > { %v2529_v61 = vpop.eup %2528 }
 0x2de   : > { %v1167_v63 = vsub.f32 %v3166_v12, %v2529_v61  ;;  %v2531_v3 = vpop.eup %2530  ;;  %v2355_v12 = vpack.c.bf16 %v1387_v16, %v1384_v11  ;;  %v1425_v11 = vld [vmem:[#allocation10 + $0x178] sm:$0xff] }
 0x2e0   : > { %v1168_v6 = vmul.f32 %v2531_v3, %v1167_v63  ;;  %v1419_v63 = vld [vmem:[#allocation10 + $0x148] sm:$0xff]  ;;  %v1420_v3 = vld [vmem:[#allocation10 + $0x150] sm:$0xff] }
 0x2e1   : > { %v2400_v4 = vpack.c.bf16 %v1419_v63, %v1416_v62  ;;  %v1619_v63 = vld [vmem:[#allocation12 + $0x50] sm:$0xff] (!%p1809_p9) }
 0x2e2   : > { %v1169_v14 = vadd.f32 %v2529_v61, %v1168_v6  ;;  %v1417_v61 = vld [vmem:[#allocation10 + $0x138] sm:$0xff]  ;;  %v1423_v6 = vld [vmem:[#allocation10 + $0x168] sm:$0xff]  ;;  %v2421_v1 = vpack.c.bf16 (!%p1809_p9), %v1620_v0, %v1619_v63 }
 0x2e3   : > { %v2375_v2 = vpack.c.bf16 %v1417_v61, %v1414_v58  ;;  %v1616_v58 = vld [vmem:[#allocation12 + $0x38] sm:$0xff] (!%p1809_p9)  ;;  %v1618_v61 = vld [vmem:[#allocation12 + $0x48] sm:$0xff] (!%p1809_p9) }
 0x2e4   : > { %1170 = vst [vmem:[#allocation3] sm:$0xff] %v1169_v14  ;;  %1301 = vmatmul.mubr.f32.vlgmr.msra.gmra.mrb[4].mxu0 %v1169_v14  ;;  %2053 = vmatmul.mubr.f32.vlgmr.msra.gmra.mrb[6].mxu1 %v1169_v14 }
 0x2e5   : > { %2352 = vmatpush1.bf16.msra.mxu0 %v2351_v10  ;;  %2383 = vmatpush3.bf16.msra.mxu1 %v2382_v13  ;;  %v1422_v10 = vld [vmem:[#allocation10 + $0x160] sm:$0xff]  ;;  %v2379_v13 = vpack.c.bf16 %v1423_v6, %v1420_v3  ;;  %v1622_v3 = vld [vmem:[#allocation12 + $0x68] sm:$0xff] (!%p1809_p9)  ;;  %v1624_v6 = vld [vmem:[#allocation12 + $0x78] sm:$0xff] (!%p1809_p9) }
 0x2e6   : > { %2354 = vmatprep.subr.bf16.mxu0 %v2353_v15  ;;  %2384 = vmatprep.subr.bf16.mxu1 %v2714_v8  ;;  %v2403_v14 = vpack.c.bf16 %v1425_v11, %v1422_v10  ;;  %v1377_v15 = vld [vmem:[#allocation4] sm:$0xff]  ;;  %v1810_v11 = vld [vmem:[%s3258_s23] ss:$0 sm:$0xff] (!%p1809_p9) }
 0x2e7   : > { %1507 = vmatprep.mubr.f32.mxu0 %v2715_v9  ;;  %2087 = vmatprep.mubr.msk.f32.mxu1 %vm2716_vm0, %v2715_v9  ;;  %v2365_v9 = vpack.c.bf16 %v1406_v38, %v1403_v37 }
 0x2e9   : > { %2356 = vmatpush1.bf16.msra.mxu0 %v2355_v12  ;;  %2386 = vmatpush3.bf16.msra.mxu1 %v2385_v21  ;;  %v1431_v12 = vrot.slane %v1426_v17, %v3140_v30  ;;  %v1439_v30 = vrot.slane %v1426_v17, %v3151_v49  ;;  %v1610_v49 = vld [vmem:[#allocation12 + $0x8] sm:$0xff] (!%p1809_p9) }
 0x2ea   : > { %2358 = vmatprep.subr.bf16.mxu0 %v2357_v22  ;;  %2387 = vmatprep.subr.bf16.mxu1 %v2714_v8 }
 0x2ed   : > { %2360 = vmatpush1.bf16.msra.mxu0 %v2359_v28  ;;  %2389 = vmatpush3.bf16.msra.mxu1 %v2388_v31  ;;  %v2435_v28 = vadd.f32 %v1435_v24, %v1228_v23 }
 0x2ee   : > { %2362 = vmatprep.subr.bf16.mxu0 %v2361_v32  ;;  %2390 = vmatprep.subr.bf16.mxu1 %v2714_v8 }
 0x2f1   : > { %2364 = vmatpush1.bf16.msra.mxu0 %v2363_v39  ;;  %2392 = vmatpush3.bf16.msra.mxu1 %v2391_v41 }
 0x2f2   : > { %2366 = vmatprep.subr.bf16.mxu0 %v2365_v9  ;;  %2393 = vmatprep.subr.bf16.mxu1 %v2714_v8 }
 0x2f5   : > { %2368 = vmatpush1.bf16.msra.mxu0 %v2367_v47  ;;  %2395 = vmatpush3.bf16.msra.mxu1 %v2394_v50  ;;  %v1611_v47 = vld [vmem:[#allocation12 + $0x10] sm:$0xff] (!%p1809_p9)  ;;  %v2406_v50 = vpack.c.bf16 (!%p1809_p9), %v1610_v49, %v1609_v46 }
 0x2f6   : > { %2370 = vmatprep.subr.bf16.mxu0 %v2369_v51  ;;  %2396 = vmatprep.subr.bf16.mxu1 %v2714_v8  ;;  %v1612_v51 = vld [vmem:[#allocation12 + $0x18] sm:$0xff] (!%p1809_p9) }
 0x2f7   : > { %v2409_v53 = vpack.c.bf16 (!%p1809_p9), %v1612_v51, %v1611_v47 }
 0x2f9   : > { %2372 = vmatpush1.bf16.msra.mxu0 %v2371_v57  ;;  %2398 = vmatpush3.bf16.msra.mxu1 %v2397_v59  ;;  %v1615_v57 = vld [vmem:[#allocation12 + $0x30] sm:$0xff] (!%p1809_p9) }
 0x2fa   : > { %2374 = vmatprep.subr.bf16.mxu0 %v2373_v60  ;;  %2399 = vmatprep.subr.bf16.mxu1 %v2714_v8  ;;  %v2415_v59 = vpack.c.bf16 (!%p1809_p9), %v1616_v58, %v1615_v57  ;;  %v1617_v60 = vld [vmem:[#allocation12 + $0x40] sm:$0xff] (!%p1809_p9) }
 0x2fb   : > { %v2418_v62 = vpack.c.bf16 (!%p1809_p9), %v1618_v61, %v1617_v60 }
 0x2fd   : > { %2376 = vmatpush1.bf16.msra.mxu0 %v2375_v2  ;;  %2401 = vmatpush3.bf16.msra.mxu1 %v2400_v4  ;;  %v1621_v2 = vld [vmem:[#allocation12 + $0x60] sm:$0xff] (!%p1809_p9) }
 0x2fe   : > { %2378 = vmatprep.subr.bf16.mxu0 %v2377_v5  ;;  %2402 = vmatprep.subr.bf16.mxu1 %v2714_v8  ;;  %v2433_v8 = vadd.f32 %v1431_v12, %v1224_v19  ;;  %v2424_v4 = vpack.c.bf16 (!%p1809_p9), %v1622_v3, %v1621_v2  ;;  %v1623_v5 = vld [vmem:[#allocation12 + $0x70] sm:$0xff] (!%p1809_p9) }
 0x2ff   : > { %v2427_v10 = vpack.c.bf16 (!%p1809_p9), %v1624_v6, %v1623_v5 }
 0x301   : > { %2380 = vmatpush1.bf16.msra.mxu0 %v2379_v13  ;;  %2404 = vmatpush3.bf16.msra.mxu1 %v2403_v14 }
 0x302   : > { %2405 = vmatprep.subr.bf16.mxu0 (!%p1809_p9), %v2717_v48 }
 0x304   : > { %1508 = vmatmul.mubr.f32.vlgmr.msra.gmra.mrb[4].mxu0 %v1377_v15  ;;  %2088 = vmatmul.mubr.f32.vlgmr.msra.gmra.mrb[8].mxu1 %v1377_v15 }
 0x305   : > { %2122 = vmatprep.mubr.msk.f32.mxu0 (!%p1809_p9), %vm2718_vm1, %v2719_v52  ;;  %2407 = vmatpush3.bf16.msra.mxu0 (!%p1809_p9), %v2406_v50 }
 0x306   : > { %2408 = vmatprep.subr.bf16.mxu0 (!%p1809_p9), %v2717_v48 }
 0x309   : > { %2410 = vmatpush3.bf16.msra.mxu0 (!%p1809_p9), %v2409_v53 }
 0x30a   : > { %2411 = vmatprep.subr.bf16.mxu0 (!%p1809_p9), %v2717_v48 }
 0x30d   : > { %2413 = vmatpush3.bf16.msra.mxu0 (!%p1809_p9), %v2412_v56 }
 0x30e   : > { %2414 = vmatprep.subr.bf16.mxu0 (!%p1809_p9), %v2717_v48 }
 0x311   : > { %2416 = vmatpush3.bf16.msra.mxu0 (!%p1809_p9), %v2415_v59 }
 0x312   : > { %2417 = vmatprep.subr.bf16.mxu0 (!%p1809_p9), %v2717_v48 }
 0x315   : > { %2419 = vmatpush3.bf16.msra.mxu0 (!%p1809_p9), %v2418_v62 }
 0x316   : > { %2420 = vmatprep.subr.bf16.mxu0 (!%p1809_p9), %v2717_v48 }
 0x319   : > { %2422 = vmatpush3.bf16.msra.mxu0 (!%p1809_p9), %v2421_v1 }
 0x31a   : > { %2423 = vmatprep.subr.bf16.mxu0 (!%p1809_p9), %v2717_v48 }
 0x31d   : > { %2425 = vmatpush3.bf16.msra.mxu0 (!%p1809_p9), %v2424_v4 }
 0x31e   : > { %2426 = vmatprep.subr.bf16.mxu0 (!%p1809_p9), %v2717_v48 }
 0x321   : > { %2428 = vmatpush3.bf16.msra.mxu0 (!%p1809_p9), %v2427_v10 }
 0x3b7   : > { %v1373_v16 = vpop.f32.mrb[6].mxu1 }
 0x3b8   : > { %v2054_v7 = vpop.f32.mrb[7].mxu1  ;;  %v1374_v39 = vadd.f32 %v1373_v16, %v1232_v35 }
 0x3d7   : > { %v1509_v20 = vpop.f32.mrb[4].mxu0  ;;  %v1580_v21 = vpop.f32.mrb[8].mxu1 }
 0x3d8   : > { %v2434_v22 = vadd.f32 %v2433_v8, %v1509_v20  ;;  %v1511_v25 = vpop.f32.mrb[5].mxu0  ;;  %v2089_v26 = vpop.f32.mrb[9].mxu1  ;;  %v1581_v36 = vadd.f32 %v1580_v21, %v1439_v30 }
 0x3d9   : > { %v2436_v29 = vadd.f32 %v2435_v28, %v1511_v25 }
 0x3da   : > { %v1807_v27 = vmul.f32 -1.442695, %v2434_v22 }
 0x3db   : > { %v1808_v31 = vmul.f32 -1.442695, %v2436_v29 }
 0x3dc   : > { %2532 = vpow2.f32 %v1807_v27 }
 0x3dd   : > { %2534 = vpow2.f32 %v1808_v31 }
 0x3e6   : > { %v2533_v32 = vpop.eup %2532 }
 0x3e7   : > { %v1592_v34 = vadd.f32 1.0, %v2533_v32  ;;  %v2535_v37 = vpop.eup %2534 }
 0x3e8   : > { %v1593_v40 = vadd.f32 1.0, %v2535_v37 }
 0x3e9   : > { %2536 = vrcp.f32 %v1592_v34 }
 0x3f3   : > { %v2537_v38 = vpop.eup %2536 }
 0x3f4   : > { %v1598_v33 = vmul.f32 %v2537_v38, %v1581_v36 }
 0x3f6   : > { %v1599_v41 = vadd.f32 %v1598_v33, %v1374_v39 }
 0x3f8   : > { %2538 = vtanh.f32 %v1599_v41 }
 0x3f9   : > { %2540 = vrcp.f32 %v1593_v40 }
 0x402   : > { %v2539_v9 = vpop.eup %2538 }
 0x403   : > { %v1601_v42 = vsub.f32 %v1377_v15, %v2539_v9  ;;  %v2541_v43 = vpop.eup %2540  ;;  %1608 = sbr.rel (%p1809_p9) target bundleno = 1407 (0x57f), region = 100 }
 0x405   : > { %v1602_v44 = vmul.f32 %v2541_v43, %v1601_v42 }
 0x407   : > { %v1603_v45 = vadd.f32 %v2539_v9, %v1602_v44 }
 0x409   : > { %1604 = vst [vmem:[#allocation4] sm:$0xff] %v1603_v45  ;;  %2123 = vmatmul.mubr.f32.vlgmr.msra.gmra.mrb[0].mxu0 (!%p1809_p9), %v1603_v45 }
 0x4dc   : > { %v1698_v13 = vpop.f32.mrb[0].mxu0 }
 0x4dd   : > { %v1699_v14 = vadd.f32 %v1810_v11, %v1698_v13  ;;  %v2124_v15 = vpop.f32.mrb[1].mxu0 }
 0x4df   : > { %v1702_v16 = vmul.f32 %v1699_v14, %v1699_v14 }
 0x4e1   : > { %1703 = vadd.xlane.f32.xlu0 %v1702_v16 }
 0x56e   : > { %v1704_v7 = vpop.xlane.xlu0 %1703 }
 0x56f   : > { %v1705_v17 = vadd.f32 1e-12, %v1704_v7 }
 0x571   : > { %2542 = vrsqrt.f32 %v1705_v17 }
 0x57b   : > { %v2543_v18 = vpop.eup %2542 }
 0x57c   : > { %v1707_v19 = vmul.f32 %v2543_v18, %v1699_v14 }
 0x57e   : > { %1708 = vst [vmem:[%s3259_s16] sm:$0xff] %v1707_v19 }
 0x57f PF: > { %s3260_s19 = sld [smem:[#allocation16_spill]] }
 0x585   : > { %s26_s25 = sadd.s32 1, %s3260_s19  }
 0x586   : > { %p23_p2 = scmp.ge.s32.totalorder %s26_s25, 10  }
 0x588   :  { %25 = sbr.rel (!%p23_p2) target bundleno = 6 (0x6), region = 127 }
 0x58f   :  { %1720 = vsyncpa [#allocation6], 1 }
 0x590   :  { %1722 = vsyncpa [#allocation6 + $0x1], 1 }
 0x591   :  { %1723 = vsyncpa [#allocation8], 1 }
 0x592   :  { %1724 = vsyncpa [#allocation11], 1 }

</bundles_post_ra>
